<compile_context>
chip_gen: v6e
topology: v6e:2x2x1
jax: 0.10.0
libtpu: 0.0.40
codegen_flags: <defaults>
</compile_context>

<pallas_src>
import jax
import jax.numpy as jnp
from jax import lax
from jax.experimental import pallas as pl
from jax.experimental.pallas import tpu as pltpu

# ---- config (stand-in for LSTMConfig) ----
INPUT_SIZE = 4
HIDDEN_SIZE = 32
NUM_LAYERS = 2
OUTPUT_SIZE = 4
SEQ_LEN = 8
PRED_LEN = 4
BATCH = 2


# --------------------------- fused forward kernel ----------------------------
def _lstm_fused_kernel(x_ref, h0_ref, c0_ref, *rest):
    """rest = [wih_pad_l, whh_pad_l, bias_l]*L + [w1_pad, w2_exp, bias_head, out, xp_scr, hs_scr]."""
    *layer_refs, w1_ref, w2e_ref, bh_ref, out_ref, xp_scr, hs_scr = rest
    num_layers = len(layer_refs) // 3

    TB, G = x_ref.shape                    # TB = T*B,  G = 4*H (128 lanes)
    L, B, _ = h0_ref.shape
    T = TB // B
    H = G // 4

    lane = lax.broadcasted_iota(jnp.int32, (B, G), 1)
    is_g = (lane >= 2 * H) & (lane < 3 * H)          # cell-gate lanes

    def cell(gates, c):
        # g-gate columns of W/bias were pre-scaled by 2, so a single sigmoid
        # over the full vreg suffices: tanh(x) = 2*sigmoid(2x) - 1.
        s = jax.nn.sigmoid(gates)                    # one EUP pass
        act = jnp.where(is_g, 2.0 * s - 1.0, s)
        # PyTorch gate order i, f, g, o at lanes [0,H),[H,2H),[2H,3H),[3H,4H).
        i_al = act                                   # i already at lanes [0, H)
        f_al = pltpu.roll(act, 3 * H, 1)             # f -> lanes [0, H)
        g_al = pltpu.roll(act, 2 * H, 1)             # g -> lanes [0, H)
        o_al = pltpu.roll(act, 1 * H, 1)             # o -> lanes [0, H)
        c_new = f_al * c + i_al * g_al               # junk lanes stay bounded
        h_new = o_al * jnp.tanh(c_new)
        return h_new, c_new

    # ---- layer-major recurrence (T, L static -> fully unrolled) -------------
    for l in range(num_layers):
        wih_ref = layer_refs[3 * l + 0]              # (G, G), pad rows zero
        whh_ref = layer_refs[3 * l + 1]              # (G, G), rows [H, G) zero
        b_ref = layer_refs[3 * l + 2]                # (1, G)

        # input-side projections for ALL timesteps in one well-shaped dot
        # (off the serial dependency chain); bias folded in here too.
        inp = x_ref[...] if l == 0 else hs_scr[...]  # (T*B, G)
        xp = jnp.dot(inp, wih_ref[...], preferred_element_type=jnp.float32)
        xp_scr[...] = xp + jnp.broadcast_to(b_ref[...], (TB, G))

        h = h0_ref[l]                                # (B, G), zero-padded
        c = c0_ref[l]
        for t in range(T):
            gates = xp_scr[pl.ds(t * B, B), :] + jnp.dot(
                h, whh_ref[...], preferred_element_type=jnp.float32)
            h, c = cell(gates, c)
            hs_scr[pl.ds(t * B, B), :] = h           # row index = t*B + b

    # ---- fused head: linear1 -> permute -> linear2, single output store -----
    y1 = jnp.dot(hs_scr[...], w1_ref[...],
                 preferred_element_type=jnp.float32)              # (T*B, O)
    out_ref[...] = jnp.dot(w2e_ref[...], y1,
                           preferred_element_type=jnp.float32) + bh_ref[...]


# ---------------------------- parameter init ---------------------------------
def init_params(key):
    params = {}
    H, G = HIDDEN_SIZE, 4 * HIDDEN_SIZE
    bound = 1.0 / jnp.sqrt(H)
    keys = jax.random.split(key, 4 * NUM_LAYERS + 4)
    k = 0
    # x2 pre-scale of the cell-gate (g) columns, folded into weights/bias so the
    # kernel can use the single-sigmoid identity tanh(x) = 2*sigmoid(2x) - 1.
    col = jnp.arange(G)
    gate_scale = jnp.where((col >= 2 * H) & (col < 3 * H), 2.0, 1.0).astype(jnp.float32)

    params["lstm"] = []
    for layer in range(NUM_LAYERS):
        d_in = INPUT_SIZE if layer == 0 else H
        w_ih = jax.random.uniform(keys[k], (G, d_in), minval=-bound, maxval=bound); k += 1
        w_hh = jax.random.uniform(keys[k], (G, H), minval=-bound, maxval=bound); k += 1
        b_ih = jax.random.uniform(keys[k], (G,), minval=-bound, maxval=bound); k += 1
        b_hh = jax.random.uniform(keys[k], (G,), minval=-bound, maxval=bound); k += 1
        w_ih_t, w_hh_t = w_ih.T, w_hh.T                    # (d_in, G), (H, G)
        bias = (b_ih + b_hh).reshape(1, G)
        # kernel-ready, zero-padded (G, G) weights; rows touched by junk lanes
        # of the padded state / input are all zero.
        wih_pad = jnp.zeros((G, G), jnp.float32).at[:d_in, :].set(w_ih_t * gate_scale)
        whh_pad = jnp.zeros((G, G), jnp.float32).at[:H, :].set(w_hh_t * gate_scale)
        params["lstm"].append(dict(
            w_ih_t=w_ih_t, w_hh_t=w_hh_t, bias=bias,       # reference copies
            wih_pad=wih_pad, whh_pad=whh_pad, bias_k=bias * gate_scale))

    b1 = 1.0 / jnp.sqrt(H)
    params["w1"] = jax.random.uniform(keys[k], (H, OUTPUT_SIZE), minval=-b1, maxval=b1); k += 1
    params["b1"] = jax.random.uniform(keys[k], (1, OUTPUT_SIZE), minval=-b1, maxval=b1); k += 1
    bound2 = 1.0 / jnp.sqrt(SEQ_LEN)
    params["w2"] = jax.random.uniform(keys[k], (PRED_LEN, SEQ_LEN), minval=-bound2, maxval=bound2); k += 1
    params["b2"] = jax.random.uniform(keys[k], (PRED_LEN, 1), minval=-bound2, maxval=bound2); k += 1
    # head linear1 weight zero-padded to the 4H lane width (rows [H, 4H) = 0)
    params["w1_pad"] = jnp.zeros((G, OUTPUT_SIZE), jnp.float32).at[:H, :].set(params["w1"])
    return params


# ---------------------------- full forward (Pallas) ---------------------------
@jax.jit
def lstm_forward(params, input_seq, seq_y, h0, c0):
    # input_seq: (B, T, D_in) batch_first, like PyTorch.  seq_y unused in fwd.
    del seq_y
    B, T, D = input_seq.shape
    H = HIDDEN_SIZE
    G = 4 * H
    P, O = PRED_LEN, OUTPUT_SIZE

    # All layout plumbing done in the XLA wrapper (free relative to the kernel):
    # time-major, zero-pad features to G lanes, flatten to (T*B, G).
    x = jnp.transpose(input_seq, (1, 0, 2)).astype(jnp.float32)       # (T, B, D)
    x = jnp.pad(x, ((0, 0), (0, 0), (0, G - D))).reshape(T * B, G)    # (T*B, G)
    h0p = jnp.pad(h0.astype(jnp.float32), ((0, 0), (0, 0), (0, G - H)))  # (L,B,G)
    c0p = jnp.pad(c0.astype(jnp.float32), ((0, 0), (0, 0), (0, G - H)))

    # Expanded head operands so the kernel's second head dot handles every
    # batch row in one matmul and stores the output once.
    w2 = params["w2"]                                                  # (P, T)
    w2_exp = jnp.einsum("pt,bc->bptc", w2,
                        jnp.eye(B, dtype=w2.dtype)).reshape(B * P, T * B)
    bias_head = params["b2"] + jnp.sum(w2, axis=1, keepdims=True) * params["b1"]  # (P, O)
    bias_head_exp = jnp.tile(bias_head, (B, 1))                        # (B*P, O)

    args = [x, h0p, c0p]
    for lp in params["lstm"]:
        args += [lp["wih_pad"], lp["whh_pad"], lp["bias_k"]]
    args += [params["w1_pad"], w2_exp, bias_head_exp]

    vmem = pl.BlockSpec(memory_space=pltpu.MemorySpace.VMEM)
    out_flat = pl.pallas_call(
        _lstm_fused_kernel,
        out_shape=jax.ShapeDtypeStruct((B * P, O), jnp.float32),
        in_specs=[vmem] * len(args),
        out_specs=vmem,
        scratch_shapes=[pltpu.VMEM((T * B, G), jnp.float32),   # xp_scr
                        pltpu.VMEM((T * B, G), jnp.float32)],  # hs_scr
    )(*args)
    return out_flat.reshape(B, P, O)


# ----------------------- pure-JAX reference for correctness -------------------
def lstm_forward_ref(params, input_seq, seq_y, h0, c0):
    del seq_y
    x = input_seq.astype(jnp.float32)                                 # (B, T, D)
    B, T, _ = x.shape
    H = HIDDEN_SIZE
    for layer in range(NUM_LAYERS):
        p = params["lstm"][layer]
        h = h0[layer]
        c = c0[layer]
        outs = []
        for t in range(T):
            gates = x[:, t] @ p["w_ih_t"] + h @ p["w_hh_t"] + p["bias"]
            i = jax.nn.sigmoid(gates[:, 0 * H:1 * H])
            f = jax.nn.sigmoid(gates[:, 1 * H:2 * H])
            g = jnp.tanh(gates[:, 2 * H:3 * H])
            o = jax.nn.sigmoid(gates[:, 3 * H:4 * H])
            c = f * c + i * g
            h = o * jnp.tanh(c)
            outs.append(h)
        x = jnp.stack(outs, axis=1)                                   # (B, T, H)
    y1 = x @ params["w1"] + params["b1"]                              # (B, T, O)
    y1 = jnp.transpose(y1, (0, 2, 1))                                 # (B, O, T)
    y2 = jnp.einsum("bot,pt->bop", y1, params["w2"]) + params["b2"].reshape(1, 1, -1)
    return jnp.transpose(y2, (0, 2, 1))                               # (B, P, O)


if __name__ == "__main__":
    key = jax.random.PRNGKey(0)
    kp, kx, ky, kh, kc = jax.random.split(key, 5)
    params = init_params(kp)

    input_seq = jax.random.normal(kx, (BATCH, SEQ_LEN, INPUT_SIZE), jnp.float32)
    seq_y = jax.random.normal(ky, (BATCH, PRED_LEN, OUTPUT_SIZE), jnp.float32)
    # torch.rand(...) initial states -> uniform [0, 1)
    h0 = jax.random.uniform(kh, (NUM_LAYERS, BATCH, HIDDEN_SIZE), jnp.float32)
    c0 = jax.random.uniform(kc, (NUM_LAYERS, BATCH, HIDDEN_SIZE), jnp.float32)

    out = jax.block_until_ready(lstm_forward(params, input_seq, seq_y, h0, c0))
    ref = lstm_forward_ref(params, input_seq, seq_y, h0, c0)

    assert out.shape == (BATCH, PRED_LEN, OUTPUT_SIZE), out.shape
    err = float(jnp.max(jnp.abs(out - ref)))
    assert err < 1e-4, err
    print("KERNEL_OK")
</pallas_src>

<mosaic_0001>
module attributes {stable_mosaic.version = 11 : i64} {
  func.func @_lstm_fused_kernel(%arg0: memref<16x128xf32, #tpu.memory_space<vmem>>, %arg1: memref<2x2x128xf32, #tpu.memory_space<vmem>>, %arg2: memref<2x2x128xf32, #tpu.memory_space<vmem>>, %arg3: memref<128x128xf32, #tpu.memory_space<vmem>>, %arg4: memref<128x128xf32, #tpu.memory_space<vmem>>, %arg5: memref<1x128xf32, #tpu.memory_space<vmem>>, %arg6: memref<128x128xf32, #tpu.memory_space<vmem>>, %arg7: memref<128x128xf32, #tpu.memory_space<vmem>>, %arg8: memref<1x128xf32, #tpu.memory_space<vmem>>, %arg9: memref<128x4xf32, #tpu.memory_space<vmem>>, %arg10: memref<8x16xf32, #tpu.memory_space<vmem>>, %arg11: memref<8x4xf32, #tpu.memory_space<vmem>>, %arg12: memref<8x4xf32, #tpu.memory_space<vmem>>, %arg13: memref<16x128xf32, #tpu.memory_space<vmem>>, %arg14: memref<16x128xf32, #tpu.memory_space<vmem>>) attributes {dimension_semantics = [], scalar_prefetch = 0 : i64, scratch_operands = 2 : i64, tpu.core_type = #tpu.core_type<tc>} {
    %0 = tpu.iota {dimensions = array<i32: 1>} : vector<2x128xi32>
    %c64_i32 = arith.constant 64 : i32
    %1 = vector.broadcast %c64_i32 : i32 to vector<2x128xi32>
    %2 = arith.cmpi sge, %0, %1 : vector<2x128xi32>
    %c96_i32 = arith.constant 96 : i32
    %3 = vector.broadcast %c96_i32 : i32 to vector<2x128xi32>
    %4 = arith.cmpi slt, %0, %3 : vector<2x128xi32>
    %5 = arith.andi %2, %4 : vector<2x128xi1>
    %c0 = arith.constant 0 : index
    %c0_0 = arith.constant 0 : index
    %6 = vector.load %arg0[%c0, %c0_0] : memref<16x128xf32, #tpu.memory_space<vmem>>, vector<16x128xf32>
    %c0_1 = arith.constant 0 : index
    %c0_2 = arith.constant 0 : index
    %7 = vector.load %arg3[%c0_1, %c0_2] : memref<128x128xf32, #tpu.memory_space<vmem>>, vector<128x128xf32>
    %cst = arith.constant dense<0.000000e+00> : vector<16x128xf32>
    %8 = tpu.matmul %6, %7, %cst {dimension_numbers = #tpu.dot_dimension_numbers<[1], [0], [0], [1], [0, 0, 1, 1], [], []>} : vector<16x128xf32>, vector<128x128xf32>, vector<16x128xf32> -> vector<16x128xf32>
    %c0_3 = arith.constant 0 : index
    %c0_4 = arith.constant 0 : index
    %9 = vector.load %arg5[%c0_3, %c0_4] : memref<1x128xf32, #tpu.memory_space<vmem>>, vector<1x128xf32>
    %10 = vector.shape_cast %9 : vector<1x128xf32> to vector<1x128xf32>
    %11 = vector.broadcast %10 : vector<1x128xf32> to vector<16x128xf32>
    %12 = arith.addf %8, %11 : vector<16x128xf32>
    %c0_5 = arith.constant 0 : index
    %c0_6 = arith.constant 0 : index
    %13 = vector.load %arg13[%c0_5, %c0_6] : memref<16x128xf32, #tpu.memory_space<vmem>>, vector<16x128xf32>
    tpu.vector_store %arg13[%c0_5, %c0_6], %12 {strides = array<i32>} : memref<16x128xf32, #tpu.memory_space<vmem>>, vector<16x128xf32>,
    %c0_7 = arith.constant 0 : index
    %c0_8 = arith.constant 0 : index
    %c0_9 = arith.constant 0 : index
    %14 = vector.load %arg1[%c0_7, %c0_8, %c0_9] : memref<2x2x128xf32, #tpu.memory_space<vmem>>, vector<1x2x128xf32>
    %15 = vector.shape_cast %14 : vector<1x2x128xf32> to vector<2x128xf32>
    %c0_10 = arith.constant 0 : index
    %c0_11 = arith.constant 0 : index
    %c0_12 = arith.constant 0 : index
    %16 = vector.load %arg2[%c0_10, %c0_11, %c0_12] : memref<2x2x128xf32, #tpu.memory_space<vmem>>, vector<1x2x128xf32>
    %17 = vector.shape_cast %16 : vector<1x2x128xf32> to vector<2x128xf32>
    %c0_13 = arith.constant 0 : index
    %c0_14 = arith.constant 0 : index
    %18 = vector.load %arg13[%c0_13, %c0_14] : memref<16x128xf32, #tpu.memory_space<vmem>>, vector<2x128xf32>
    %c0_15 = arith.constant 0 : index
    %c0_16 = arith.constant 0 : index
    %19 = vector.load %arg4[%c0_15, %c0_16] : memref<128x128xf32, #tpu.memory_space<vmem>>, vector<128x128xf32>
    %cst_17 = arith.constant dense<0.000000e+00> : vector<2x128xf32>
    %20 = tpu.matmul %15, %19, %cst_17 {dimension_numbers = #tpu.dot_dimension_numbers<[1], [0], [0], [1], [0, 0, 1, 1], [], []>} : vector<2x128xf32>, vector<128x128xf32>, vector<2x128xf32> -> vector<2x128xf32>
    %21 = arith.addf %18, %20 : vector<2x128xf32>
    %22 = arith.negf %21 : vector<2x128xf32>
    %23 = math.exp %22 : vector<2x128xf32>
    %cst_18 = arith.constant 1.000000e+00 : f32
    %24 = vector.broadcast %cst_18 : f32 to vector<2x128xf32>
    %25 = arith.addf %24, %23 : vector<2x128xf32>
    %26 = arith.divf %24, %25 : vector<2x128xf32>
    %cst_19 = arith.constant 2.000000e+00 : f32
    %27 = vector.broadcast %cst_19 : f32 to vector<2x128xf32>
    %28 = arith.mulf %27, %26 : vector<2x128xf32>
    %cst_20 = arith.constant 1.000000e+00 : f32
    %29 = vector.broadcast %cst_20 : f32 to vector<2x128xf32>
    %30 = arith.subf %28, %29 : vector<2x128xf32>
    %31 = arith.select %5, %30, %26 : vector<2x128xi1>, vector<2x128xf32>
    %c96_i32_21 = arith.constant 96 : i32
    %32 = tpu.dynamic_rotate %31 by %c96_i32_21 dim 1 : vector<2x128xf32>, i32 -> vector<2x128xf32>
    %c64_i32_22 = arith.constant 64 : i32
    %33 = tpu.dynamic_rotate %31 by %c64_i32_22 dim 1 : vector<2x128xf32>, i32 -> vector<2x128xf32>
    %c32_i32 = arith.constant 32 : i32
    %34 = tpu.dynamic_rotate %31 by %c32_i32 dim 1 : vector<2x128xf32>, i32 -> vector<2x128xf32>
    %35 = arith.mulf %32, %17 : vector<2x128xf32>
    %36 = arith.mulf %31, %33 : vector<2x128xf32>
    %37 = arith.addf %35, %36 : vector<2x128xf32>
    %38 = math.tanh %37 : vector<2x128xf32>
    %39 = arith.mulf %34, %38 : vector<2x128xf32>
    %c0_23 = arith.constant 0 : index
    %c0_24 = arith.constant 0 : index
    %40 = vector.load %arg14[%c0_23, %c0_24] : memref<16x128xf32, #tpu.memory_space<vmem>>, vector<2x128xf32>
    tpu.vector_store %arg14[%c0_23, %c0_24], %39 {strides = array<i32>} : memref<16x128xf32, #tpu.memory_space<vmem>>, vector<2x128xf32>,
    %c2 = arith.constant 2 : index
    %c0_25 = arith.constant 0 : index
    %41 = vector.load %arg13[%c2, %c0_25] : memref<16x128xf32, #tpu.memory_space<vmem>>, vector<2x128xf32>
    %c0_26 = arith.constant 0 : index
    %c0_27 = arith.constant 0 : index
    %42 = vector.load %arg4[%c0_26, %c0_27] : memref<128x128xf32, #tpu.memory_space<vmem>>, vector<128x128xf32>
    %cst_28 = arith.constant dense<0.000000e+00> : vector<2x128xf32>
    %43 = tpu.matmul %39, %42, %cst_28 {dimension_numbers = #tpu.dot_dimension_numbers<[1], [0], [0], [1], [0, 0, 1, 1], [], []>} : vector<2x128xf32>, vector<128x128xf32>, vector<2x128xf32> -> vector<2x128xf32>
    %44 = arith.addf %41, %43 : vector<2x128xf32>
    %45 = arith.negf %44 : vector<2x128xf32>
    %46 = math.exp %45 : vector<2x128xf32>
    %cst_29 = arith.constant 1.000000e+00 : f32
    %47 = vector.broadcast %cst_29 : f32 to vector<2x128xf32>
    %48 = arith.addf %47, %46 : vector<2x128xf32>
    %49 = arith.divf %47, %48 : vector<2x128xf32>
    %cst_30 = arith.constant 2.000000e+00 : f32
    %50 = vector.broadcast %cst_30 : f32 to vector<2x128xf32>
    %51 = arith.mulf %50, %49 : vector<2x128xf32>
    %cst_31 = arith.constant 1.000000e+00 : f32
    %52 = vector.broadcast %cst_31 : f32 to vector<2x128xf32>
    %53 = arith.subf %51, %52 : vector<2x128xf32>
    %54 = arith.select %5, %53, %49 : vector<2x128xi1>, vector<2x128xf32>
    %c96_i32_32 = arith.constant 96 : i32
    %55 = tpu.dynamic_rotate %54 by %c96_i32_32 dim 1 : vector<2x128xf32>, i32 -> vector<2x128xf32>
    %c64_i32_33 = arith.constant 64 : i32
    %56 = tpu.dynamic_rotate %54 by %c64_i32_33 dim 1 : vector<2x128xf32>, i32 -> vector<2x128xf32>
    %c32_i32_34 = arith.constant 32 : i32
    %57 = tpu.dynamic_rotate %54 by %c32_i32_34 dim 1 : vector<2x128xf32>, i32 -> vector<2x128xf32>
    %58 = arith.mulf %55, %37 : vector<2x128xf32>
    %59 = arith.mulf %54, %56 : vector<2x128xf32>
    %60 = arith.addf %58, %59 : vector<2x128xf32>
    %61 = math.tanh %60 : vector<2x128xf32>
    %62 = arith.mulf %57, %61 : vector<2x128xf32>
    %c2_35 = arith.constant 2 : index
    %c0_36 = arith.constant 0 : index
    %63 = vector.load %arg14[%c2_35, %c0_36] : memref<16x128xf32, #tpu.memory_space<vmem>>, vector<2x128xf32>
    tpu.vector_store %arg14[%c2_35, %c0_36], %62 {strides = array<i32>} : memref<16x128xf32, #tpu.memory_space<vmem>>, vector<2x128xf32>,
    %c4 = arith.constant 4 : index
    %c0_37 = arith.constant 0 : index
    %64 = vector.load %arg13[%c4, %c0_37] : memref<16x128xf32, #tpu.memory_space<vmem>>, vector<2x128xf32>
    %c0_38 = arith.constant 0 : index
    %c0_39 = arith.constant 0 : index
    %65 = vector.load %arg4[%c0_38, %c0_39] : memref<128x128xf32, #tpu.memory_space<vmem>>, vector<128x128xf32>
    %cst_40 = arith.constant dense<0.000000e+00> : vector<2x128xf32>
    %66 = tpu.matmul %62, %65, %cst_40 {dimension_numbers = #tpu.dot_dimension_numbers<[1], [0], [0], [1], [0, 0, 1, 1], [], []>} : vector<2x128xf32>, vector<128x128xf32>, vector<2x128xf32> -> vector<2x128xf32>
    %67 = arith.addf %64, %66 : vector<2x128xf32>
    %68 = arith.negf %67 : vector<2x128xf32>
    %69 = math.exp %68 : vector<2x128xf32>
    %cst_41 = arith.constant 1.000000e+00 : f32
    %70 = vector.broadcast %cst_41 : f32 to vector<2x128xf32>
    %71 = arith.addf %70, %69 : vector<2x128xf32>
    %72 = arith.divf %70, %71 : vector<2x128xf32>
    %cst_42 = arith.constant 2.000000e+00 : f32
    %73 = vector.broadcast %cst_42 : f32 to vector<2x128xf32>
    %74 = arith.mulf %73, %72 : vector<2x128xf32>
    %cst_43 = arith.constant 1.000000e+00 : f32
    %75 = vector.broadcast %cst_43 : f32 to vector<2x128xf32>
    %76 = arith.subf %74, %75 : vector<2x128xf32>
    %77 = arith.select %5, %76, %72 : vector<2x128xi1>, vector<2x128xf32>
    %c96_i32_44 = arith.constant 96 : i32
    %78 = tpu.dynamic_rotate %77 by %c96_i32_44 dim 1 : vector<2x128xf32>, i32 -> vector<2x128xf32>
    %c64_i32_45 = arith.constant 64 : i32
    %79 = tpu.dynamic_rotate %77 by %c64_i32_45 dim 1 : vector<2x128xf32>, i32 -> vector<2x128xf32>
    %c32_i32_46 = arith.constant 32 : i32
    %80 = tpu.dynamic_rotate %77 by %c32_i32_46 dim 1 : vector<2x128xf32>, i32 -> vector<2x128xf32>
    %81 = arith.mulf %78, %60 : vector<2x128xf32>
    %82 = arith.mulf %77, %79 : vector<2x128xf32>
    %83 = arith.addf %81, %82 : vector<2x128xf32>
    %84 = math.tanh %83 : vector<2x128xf32>
    %85 = arith.mulf %80, %84 : vector<2x128xf32>
    %c4_47 = arith.constant 4 : index
    %c0_48 = arith.constant 0 : index
    %86 = vector.load %arg14[%c4_47, %c0_48] : memref<16x128xf32, #tpu.memory_space<vmem>>, vector<2x128xf32>
    tpu.vector_store %arg14[%c4_47, %c0_48], %85 {strides = array<i32>} : memref<16x128xf32, #tpu.memory_space<vmem>>, vector<2x128xf32>,
    %c6 = arith.constant 6 : index
    %c0_49 = arith.constant 0 : index
    %87 = vector.load %arg13[%c6, %c0_49] : memref<16x128xf32, #tpu.memory_space<vmem>>, vector<2x128xf32>
    %c0_50 = arith.constant 0 : index
    %c0_51 = arith.constant 0 : index
    %88 = vector.load %arg4[%c0_50, %c0_51] : memref<128x128xf32, #tpu.memory_space<vmem>>, vector<128x128xf32>
    %cst_52 = arith.constant dense<0.000000e+00> : vector<2x128xf32>
    %89 = tpu.matmul %85, %88, %cst_52 {dimension_numbers = #tpu.dot_dimension_numbers<[1], [0], [0], [1], [0, 0, 1, 1], [], []>} : vector<2x128xf32>, vector<128x128xf32>, vector<2x128xf32> -> vector<2x128xf32>
    %90 = arith.addf %87, %89 : vector<2x128xf32>
    %91 = arith.negf %90 : vector<2x128xf32>
    %92 = math.exp %91 : vector<2x128xf32>
    %cst_53 = arith.constant 1.000000e+00 : f32
    %93 = vector.broadcast %cst_53 : f32 to vector<2x128xf32>
    %94 = arith.addf %93, %92 : vector<2x128xf32>
    %95 = arith.divf %93, %94 : vector<2x128xf32>
    %cst_54 = arith.constant 2.000000e+00 : f32
    %96 = vector.broadcast %cst_54 : f32 to vector<2x128xf32>
    %97 = arith.mulf %96, %95 : vector<2x128xf32>
    %cst_55 = arith.constant 1.000000e+00 : f32
    %98 = vector.broadcast %cst_55 : f32 to vector<2x128xf32>
    %99 = arith.subf %97, %98 : vector<2x128xf32>
    %100 = arith.select %5, %99, %95 : vector<2x128xi1>, vector<2x128xf32>
    %c96_i32_56 = arith.constant 96 : i32
    %101 = tpu.dynamic_rotate %100 by %c96_i32_56 dim 1 : vector<2x128xf32>, i32 -> vector<2x128xf32>
    %c64_i32_57 = arith.constant 64 : i32
    %102 = tpu.dynamic_rotate %100 by %c64_i32_57 dim 1 : vector<2x128xf32>, i32 -> vector<2x128xf32>
    %c32_i32_58 = arith.constant 32 : i32
    %103 = tpu.dynamic_rotate %100 by %c32_i32_58 dim 1 : vector<2x128xf32>, i32 -> vector<2x128xf32>
    %104 = arith.mulf %101, %83 : vector<2x128xf32>
    %105 = arith.mulf %100, %102 : vector<2x128xf32>
    %106 = arith.addf %104, %105 : vector<2x128xf32>
    %107 = math.tanh %106 : vector<2x128xf32>
    %108 = arith.mulf %103, %107 : vector<2x128xf32>
    %c6_59 = arith.constant 6 : index
    %c0_60 = arith.constant 0 : index
    %109 = vector.load %arg14[%c6_59, %c0_60] : memref<16x128xf32, #tpu.memory_space<vmem>>, vector<2x128xf32>
    tpu.vector_store %arg14[%c6_59, %c0_60], %108 {strides = array<i32>} : memref<16x128xf32, #tpu.memory_space<vmem>>, vector<2x128xf32>,
    %c8 = arith.constant 8 : index
    %c0_61 = arith.constant 0 : index
    %110 = vector.load %arg13[%c8, %c0_61] : memref<16x128xf32, #tpu.memory_space<vmem>>, vector<2x128xf32>
    %c0_62 = arith.constant 0 : index
    %c0_63 = arith.constant 0 : index
    %111 = vector.load %arg4[%c0_62, %c0_63] : memref<128x128xf32, #tpu.memory_space<vmem>>, vector<128x128xf32>
    %cst_64 = arith.constant dense<0.000000e+00> : vector<2x128xf32>
    %112 = tpu.matmul %108, %111, %cst_64 {dimension_numbers = #tpu.dot_dimension_numbers<[1], [0], [0], [1], [0, 0, 1, 1], [], []>} : vector<2x128xf32>, vector<128x128xf32>, vector<2x128xf32> -> vector<2x128xf32>
    %113 = arith.addf %110, %112 : vector<2x128xf32>
    %114 = arith.negf %113 : vector<2x128xf32>
    %115 = math.exp %114 : vector<2x128xf32>
    %cst_65 = arith.constant 1.000000e+00 : f32
    %116 = vector.broadcast %cst_65 : f32 to vector<2x128xf32>
    %117 = arith.addf %116, %115 : vector<2x128xf32>
    %118 = arith.divf %116, %117 : vector<2x128xf32>
    %cst_66 = arith.constant 2.000000e+00 : f32
    %119 = vector.broadcast %cst_66 : f32 to vector<2x128xf32>
    %120 = arith.mulf %119, %118 : vector<2x128xf32>
    %cst_67 = arith.constant 1.000000e+00 : f32
    %121 = vector.broadcast %cst_67 : f32 to vector<2x128xf32>
    %122 = arith.subf %120, %121 : vector<2x128xf32>
    %123 = arith.select %5, %122, %118 : vector<2x128xi1>, vector<2x128xf32>
    %c96_i32_68 = arith.constant 96 : i32
    %124 = tpu.dynamic_rotate %123 by %c96_i32_68 dim 1 : vector<2x128xf32>, i32 -> vector<2x128xf32>
    %c64_i32_69 = arith.constant 64 : i32
    %125 = tpu.dynamic_rotate %123 by %c64_i32_69 dim 1 : vector<2x128xf32>, i32 -> vector<2x128xf32>
    %c32_i32_70 = arith.constant 32 : i32
    %126 = tpu.dynamic_rotate %123 by %c32_i32_70 dim 1 : vector<2x128xf32>, i32 -> vector<2x128xf32>
    %127 = arith.mulf %124, %106 : vector<2x128xf32>
    %128 = arith.mulf %123, %125 : vector<2x128xf32>
    %129 = arith.addf %127, %128 : vector<2x128xf32>
    %130 = math.tanh %129 : vector<2x128xf32>
    %131 = arith.mulf %126, %130 : vector<2x128xf32>
    %c8_71 = arith.constant 8 : index
    %c0_72 = arith.constant 0 : index
    %132 = vector.load %arg14[%c8_71, %c0_72] : memref<16x128xf32, #tpu.memory_space<vmem>>, vector<2x128xf32>
    tpu.vector_store %arg14[%c8_71, %c0_72], %131 {strides = array<i32>} : memref<16x128xf32, #tpu.memory_space<vmem>>, vector<2x128xf32>,
    %c10 = arith.constant 10 : index
    %c0_73 = arith.constant 0 : index
    %133 = vector.load %arg13[%c10, %c0_73] : memref<16x128xf32, #tpu.memory_space<vmem>>, vector<2x128xf32>
    %c0_74 = arith.constant 0 : index
    %c0_75 = arith.constant 0 : index
    %134 = vector.load %arg4[%c0_74, %c0_75] : memref<128x128xf32, #tpu.memory_space<vmem>>, vector<128x128xf32>
    %cst_76 = arith.constant dense<0.000000e+00> : vector<2x128xf32>
    %135 = tpu.matmul %131, %134, %cst_76 {dimension_numbers = #tpu.dot_dimension_numbers<[1], [0], [0], [1], [0, 0, 1, 1], [], []>} : vector<2x128xf32>, vector<128x128xf32>, vector<2x128xf32> -> vector<2x128xf32>
    %136 = arith.addf %133, %135 : vector<2x128xf32>
    %137 = arith.negf %136 : vector<2x128xf32>
    %138 = math.exp %137 : vector<2x128xf32>
    %cst_77 = arith.constant 1.000000e+00 : f32
    %139 = vector.broadcast %cst_77 : f32 to vector<2x128xf32>
    %140 = arith.addf %139, %138 : vector<2x128xf32>
    %141 = arith.divf %139, %140 : vector<2x128xf32>
    %cst_78 = arith.constant 2.000000e+00 : f32
    %142 = vector.broadcast %cst_78 : f32 to vector<2x128xf32>
    %143 = arith.mulf %142, %141 : vector<2x128xf32>
    %cst_79 = arith.constant 1.000000e+00 : f32
    %144 = vector.broadcast %cst_79 : f32 to vector<2x128xf32>
    %145 = arith.subf %143, %144 : vector<2x128xf32>
    %146 = arith.select %5, %145, %141 : vector<2x128xi1>, vector<2x128xf32>
    %c96_i32_80 = arith.constant 96 : i32
    %147 = tpu.dynamic_rotate %146 by %c96_i32_80 dim 1 : vector<2x128xf32>, i32 -> vector<2x128xf32>
    %c64_i32_81 = arith.constant 64 : i32
    %148 = tpu.dynamic_rotate %146 by %c64_i32_81 dim 1 : vector<2x128xf32>, i32 -> vector<2x128xf32>
    %c32_i32_82 = arith.constant 32 : i32
    %149 = tpu.dynamic_rotate %146 by %c32_i32_82 dim 1 : vector<2x128xf32>, i32 -> vector<2x128xf32>
    %150 = arith.mulf %147, %129 : vector<2x128xf32>
    %151 = arith.mulf %146, %148 : vector<2x128xf32>
    %152 = arith.addf %150, %151 : vector<2x128xf32>
    %153 = math.tanh %152 : vector<2x128xf32>
    %154 = arith.mulf %149, %153 : vector<2x128xf32>
    %c10_83 = arith.constant 10 : index
    %c0_84 = arith.constant 0 : index
    %155 = vector.load %arg14[%c10_83, %c0_84] : memref<16x128xf32, #tpu.memory_space<vmem>>, vector<2x128xf32>
    tpu.vector_store %arg14[%c10_83, %c0_84], %154 {strides = array<i32>} : memref<16x128xf32, #tpu.memory_space<vmem>>, vector<2x128xf32>,
    %c12 = arith.constant 12 : index
    %c0_85 = arith.constant 0 : index
    %156 = vector.load %arg13[%c12, %c0_85] : memref<16x128xf32, #tpu.memory_space<vmem>>, vector<2x128xf32>
    %c0_86 = arith.constant 0 : index
    %c0_87 = arith.constant 0 : index
    %157 = vector.load %arg4[%c0_86, %c0_87] : memref<128x128xf32, #tpu.memory_space<vmem>>, vector<128x128xf32>
    %cst_88 = arith.constant dense<0.000000e+00> : vector<2x128xf32>
    %158 = tpu.matmul %154, %157, %cst_88 {dimension_numbers = #tpu.dot_dimension_numbers<[1], [0], [0], [1], [0, 0, 1, 1], [], []>} : vector<2x128xf32>, vector<128x128xf32>, vector<2x128xf32> -> vector<2x128xf32>
    %159 = arith.addf %156, %158 : vector<2x128xf32>
    %160 = arith.negf %159 : vector<2x128xf32>
    %161 = math.exp %160 : vector<2x128xf32>
    %cst_89 = arith.constant 1.000000e+00 : f32
    %162 = vector.broadcast %cst_89 : f32 to vector<2x128xf32>
    %163 = arith.addf %162, %161 : vector<2x128xf32>
    %164 = arith.divf %162, %163 : vector<2x128xf32>
    %cst_90 = arith.constant 2.000000e+00 : f32
    %165 = vector.broadcast %cst_90 : f32 to vector<2x128xf32>
    %166 = arith.mulf %165, %164 : vector<2x128xf32>
    %cst_91 = arith.constant 1.000000e+00 : f32
    %167 = vector.broadcast %cst_91 : f32 to vector<2x128xf32>
    %168 = arith.subf %166, %167 : vector<2x128xf32>
    %169 = arith.select %5, %168, %164 : vector<2x128xi1>, vector<2x128xf32>
    %c96_i32_92 = arith.constant 96 : i32
    %170 = tpu.dynamic_rotate %169 by %c96_i32_92 dim 1 : vector<2x128xf32>, i32 -> vector<2x128xf32>
    %c64_i32_93 = arith.constant 64 : i32
    %171 = tpu.dynamic_rotate %169 by %c64_i32_93 dim 1 : vector<2x128xf32>, i32 -> vector<2x128xf32>
    %c32_i32_94 = arith.constant 32 : i32
    %172 = tpu.dynamic_rotate %169 by %c32_i32_94 dim 1 : vector<2x128xf32>, i32 -> vector<2x128xf32>
    %173 = arith.mulf %170, %152 : vector<2x128xf32>
    %174 = arith.mulf %169, %171 : vector<2x128xf32>
    %175 = arith.addf %173, %174 : vector<2x128xf32>
    %176 = math.tanh %175 : vector<2x128xf32>
    %177 = arith.mulf %172, %176 : vector<2x128xf32>
    %c12_95 = arith.constant 12 : index
    %c0_96 = arith.constant 0 : index
    %178 = vector.load %arg14[%c12_95, %c0_96] : memref<16x128xf32, #tpu.memory_space<vmem>>, vector<2x128xf32>
    tpu.vector_store %arg14[%c12_95, %c0_96], %177 {strides = array<i32>} : memref<16x128xf32, #tpu.memory_space<vmem>>, vector<2x128xf32>,
    %c14 = arith.constant 14 : index
    %c0_97 = arith.constant 0 : index
    %179 = vector.load %arg13[%c14, %c0_97] : memref<16x128xf32, #tpu.memory_space<vmem>>, vector<2x128xf32>
    %c0_98 = arith.constant 0 : index
    %c0_99 = arith.constant 0 : index
    %180 = vector.load %arg4[%c0_98, %c0_99] : memref<128x128xf32, #tpu.memory_space<vmem>>, vector<128x128xf32>
    %cst_100 = arith.constant dense<0.000000e+00> : vector<2x128xf32>
    %181 = tpu.matmul %177, %180, %cst_100 {dimension_numbers = #tpu.dot_dimension_numbers<[1], [0], [0], [1], [0, 0, 1, 1], [], []>} : vector<2x128xf32>, vector<128x128xf32>, vector<2x128xf32> -> vector<2x128xf32>
    %182 = arith.addf %179, %181 : vector<2x128xf32>
    %183 = arith.negf %182 : vector<2x128xf32>
    %184 = math.exp %183 : vector<2x128xf32>
    %cst_101 = arith.constant 1.000000e+00 : f32
    %185 = vector.broadcast %cst_101 : f32 to vector<2x128xf32>
    %186 = arith.addf %185, %184 : vector<2x128xf32>
    %187 = arith.divf %185, %186 : vector<2x128xf32>
    %cst_102 = arith.constant 2.000000e+00 : f32
    %188 = vector.broadcast %cst_102 : f32 to vector<2x128xf32>
    %189 = arith.mulf %188, %187 : vector<2x128xf32>
    %cst_103 = arith.constant 1.000000e+00 : f32
    %190 = vector.broadcast %cst_103 : f32 to vector<2x128xf32>
    %191 = arith.subf %189, %190 : vector<2x128xf32>
    %192 = arith.select %5, %191, %187 : vector<2x128xi1>, vector<2x128xf32>
    %c96_i32_104 = arith.constant 96 : i32
    %193 = tpu.dynamic_rotate %192 by %c96_i32_104 dim 1 : vector<2x128xf32>, i32 -> vector<2x128xf32>
    %c64_i32_105 = arith.constant 64 : i32
    %194 = tpu.dynamic_rotate %192 by %c64_i32_105 dim 1 : vector<2x128xf32>, i32 -> vector<2x128xf32>
    %c32_i32_106 = arith.constant 32 : i32
    %195 = tpu.dynamic_rotate %192 by %c32_i32_106 dim 1 : vector<2x128xf32>, i32 -> vector<2x128xf32>
    %196 = arith.mulf %193, %175 : vector<2x128xf32>
    %197 = arith.mulf %192, %194 : vector<2x128xf32>
    %198 = arith.addf %196, %197 : vector<2x128xf32>
    %199 = math.tanh %198 : vector<2x128xf32>
    %200 = arith.mulf %195, %199 : vector<2x128xf32>
    %c14_107 = arith.constant 14 : index
    %c0_108 = arith.constant 0 : index
    %201 = vector.load %arg14[%c14_107, %c0_108] : memref<16x128xf32, #tpu.memory_space<vmem>>, vector<2x128xf32>
    tpu.vector_store %arg14[%c14_107, %c0_108], %200 {strides = array<i32>} : memref<16x128xf32, #tpu.memory_space<vmem>>, vector<2x128xf32>,
    %c0_109 = arith.constant 0 : index
    %c0_110 = arith.constant 0 : index
    %202 = vector.load %arg14[%c0_109, %c0_110] : memref<16x128xf32, #tpu.memory_space<vmem>>, vector<16x128xf32>
    %c0_111 = arith.constant 0 : index
    %c0_112 = arith.constant 0 : index
    %203 = vector.load %arg6[%c0_111, %c0_112] : memref<128x128xf32, #tpu.memory_space<vmem>>, vector<128x128xf32>
    %cst_113 = arith.constant dense<0.000000e+00> : vector<16x128xf32>
    %204 = tpu.matmul %202, %203, %cst_113 {dimension_numbers = #tpu.dot_dimension_numbers<[1], [0], [0], [1], [0, 0, 1, 1], [], []>} : vector<16x128xf32>, vector<128x128xf32>, vector<16x128xf32> -> vector<16x128xf32>
    %c0_114 = arith.constant 0 : index
    %c0_115 = arith.constant 0 : index
    %205 = vector.load %arg8[%c0_114, %c0_115] : memref<1x128xf32, #tpu.memory_space<vmem>>, vector<1x128xf32>
    %206 = vector.shape_cast %205 : vector<1x128xf32> to vector<1x128xf32>
    %207 = vector.broadcast %206 : vector<1x128xf32> to vector<16x128xf32>
    %208 = arith.addf %204, %207 : vector<16x128xf32>
    %c0_116 = arith.constant 0 : index
    %c0_117 = arith.constant 0 : index
    %209 = vector.load %arg13[%c0_116, %c0_117] : memref<16x128xf32, #tpu.memory_space<vmem>>, vector<16x128xf32>
    tpu.vector_store %arg13[%c0_116, %c0_117], %208 {strides = array<i32>} : memref<16x128xf32, #tpu.memory_space<vmem>>, vector<16x128xf32>,
    %c1 = arith.constant 1 : index
    %c0_118 = arith.constant 0 : index
    %c0_119 = arith.constant 0 : index
    %210 = vector.load %arg1[%c1, %c0_118, %c0_119] : memref<2x2x128xf32, #tpu.memory_space<vmem>>, vector<1x2x128xf32>
    %211 = vector.shape_cast %210 : vector<1x2x128xf32> to vector<2x128xf32>
    %c1_120 = arith.constant 1 : index
    %c0_121 = arith.constant 0 : index
    %c0_122 = arith.constant 0 : index
    %212 = vector.load %arg2[%c1_120, %c0_121, %c0_122] : memref<2x2x128xf32, #tpu.memory_space<vmem>>, vector<1x2x128xf32>
    %213 = vector.shape_cast %212 : vector<1x2x128xf32> to vector<2x128xf32>
    %c0_123 = arith.constant 0 : index
    %c0_124 = arith.constant 0 : index
    %214 = vector.load %arg13[%c0_123, %c0_124] : memref<16x128xf32, #tpu.memory_space<vmem>>, vector<2x128xf32>
    %c0_125 = arith.constant 0 : index
    %c0_126 = arith.constant 0 : index
    %215 = vector.load %arg7[%c0_125, %c0_126] : memref<128x128xf32, #tpu.memory_space<vmem>>, vector<128x128xf32>
    %cst_127 = arith.constant dense<0.000000e+00> : vector<2x128xf32>
    %216 = tpu.matmul %211, %215, %cst_127 {dimension_numbers = #tpu.dot_dimension_numbers<[1], [0], [0], [1], [0, 0, 1, 1], [], []>} : vector<2x128xf32>, vector<128x128xf32>, vector<2x128xf32> -> vector<2x128xf32>
    %217 = arith.addf %214, %216 : vector<2x128xf32>
    %218 = arith.negf %217 : vector<2x128xf32>
    %219 = math.exp %218 : vector<2x128xf32>
    %cst_128 = arith.constant 1.000000e+00 : f32
    %220 = vector.broadcast %cst_128 : f32 to vector<2x128xf32>
    %221 = arith.addf %220, %219 : vector<2x128xf32>
    %222 = arith.divf %220, %221 : vector<2x128xf32>
    %cst_129 = arith.constant 2.000000e+00 : f32
    %223 = vector.broadcast %cst_129 : f32 to vector<2x128xf32>
    %224 = arith.mulf %223, %222 : vector<2x128xf32>
    %cst_130 = arith.constant 1.000000e+00 : f32
    %225 = vector.broadcast %cst_130 : f32 to vector<2x128xf32>
    %226 = arith.subf %224, %225 : vector<2x128xf32>
    %227 = arith.select %5, %226, %222 : vector<2x128xi1>, vector<2x128xf32>
    %c96_i32_131 = arith.constant 96 : i32
    %228 = tpu.dynamic_rotate %227 by %c96_i32_131 dim 1 : vector<2x128xf32>, i32 -> vector<2x128xf32>
    %c64_i32_132 = arith.constant 64 : i32
    %229 = tpu.dynamic_rotate %227 by %c64_i32_132 dim 1 : vector<2x128xf32>, i32 -> vector<2x128xf32>
    %c32_i32_133 = arith.constant 32 : i32
    %230 = tpu.dynamic_rotate %227 by %c32_i32_133 dim 1 : vector<2x128xf32>, i32 -> vector<2x128xf32>
    %231 = arith.mulf %228, %213 : vector<2x128xf32>
    %232 = arith.mulf %227, %229 : vector<2x128xf32>
    %233 = arith.addf %231, %232 : vector<2x128xf32>
    %234 = math.tanh %233 : vector<2x128xf32>
    %235 = arith.mulf %230, %234 : vector<2x128xf32>
    %c0_134 = arith.constant 0 : index
    %c0_135 = arith.constant 0 : index
    %236 = vector.load %arg14[%c0_134, %c0_135] : memref<16x128xf32, #tpu.memory_space<vmem>>, vector<2x128xf32>
    tpu.vector_store %arg14[%c0_134, %c0_135], %235 {strides = array<i32>} : memref<16x128xf32, #tpu.memory_space<vmem>>, vector<2x128xf32>,
    %c2_136 = arith.constant 2 : index
    %c0_137 = arith.constant 0 : index
    %237 = vector.load %arg13[%c2_136, %c0_137] : memref<16x128xf32, #tpu.memory_space<vmem>>, vector<2x128xf32>
    %c0_138 = arith.constant 0 : index
    %c0_139 = arith.constant 0 : index
    %238 = vector.load %arg7[%c0_138, %c0_139] : memref<128x128xf32, #tpu.memory_space<vmem>>, vector<128x128xf32>
    %cst_140 = arith.constant dense<0.000000e+00> : vector<2x128xf32>
    %239 = tpu.matmul %235, %238, %cst_140 {dimension_numbers = #tpu.dot_dimension_numbers<[1], [0], [0], [1], [0, 0, 1, 1], [], []>} : vector<2x128xf32>, vector<128x128xf32>, vector<2x128xf32> -> vector<2x128xf32>
    %240 = arith.addf %237, %239 : vector<2x128xf32>
    %241 = arith.negf %240 : vector<2x128xf32>
    %242 = math.exp %241 : vector<2x128xf32>
    %cst_141 = arith.constant 1.000000e+00 : f32
    %243 = vector.broadcast %cst_141 : f32 to vector<2x128xf32>
    %244 = arith.addf %243, %242 : vector<2x128xf32>
    %245 = arith.divf %243, %244 : vector<2x128xf32>
    %cst_142 = arith.constant 2.000000e+00 : f32
    %246 = vector.broadcast %cst_142 : f32 to vector<2x128xf32>
    %247 = arith.mulf %246, %245 : vector<2x128xf32>
    %cst_143 = arith.constant 1.000000e+00 : f32
    %248 = vector.broadcast %cst_143 : f32 to vector<2x128xf32>
    %249 = arith.subf %247, %248 : vector<2x128xf32>
    %250 = arith.select %5, %249, %245 : vector<2x128xi1>, vector<2x128xf32>
    %c96_i32_144 = arith.constant 96 : i32
    %251 = tpu.dynamic_rotate %250 by %c96_i32_144 dim 1 : vector<2x128xf32>, i32 -> vector<2x128xf32>
    %c64_i32_145 = arith.constant 64 : i32
    %252 = tpu.dynamic_rotate %250 by %c64_i32_145 dim 1 : vector<2x128xf32>, i32 -> vector<2x128xf32>
    %c32_i32_146 = arith.constant 32 : i32
    %253 = tpu.dynamic_rotate %250 by %c32_i32_146 dim 1 : vector<2x128xf32>, i32 -> vector<2x128xf32>
    %254 = arith.mulf %251, %233 : vector<2x128xf32>
    %255 = arith.mulf %250, %252 : vector<2x128xf32>
    %256 = arith.addf %254, %255 : vector<2x128xf32>
    %257 = math.tanh %256 : vector<2x128xf32>
    %258 = arith.mulf %253, %257 : vector<2x128xf32>
    %c2_147 = arith.constant 2 : index
    %c0_148 = arith.constant 0 : index
    %259 = vector.load %arg14[%c2_147, %c0_148] : memref<16x128xf32, #tpu.memory_space<vmem>>, vector<2x128xf32>
    tpu.vector_store %arg14[%c2_147, %c0_148], %258 {strides = array<i32>} : memref<16x128xf32, #tpu.memory_space<vmem>>, vector<2x128xf32>,
    %c4_149 = arith.constant 4 : index
    %c0_150 = arith.constant 0 : index
    %260 = vector.load %arg13[%c4_149, %c0_150] : memref<16x128xf32, #tpu.memory_space<vmem>>, vector<2x128xf32>
    %c0_151 = arith.constant 0 : index
    %c0_152 = arith.constant 0 : index
    %261 = vector.load %arg7[%c0_151, %c0_152] : memref<128x128xf32, #tpu.memory_space<vmem>>, vector<128x128xf32>
    %cst_153 = arith.constant dense<0.000000e+00> : vector<2x128xf32>
    %262 = tpu.matmul %258, %261, %cst_153 {dimension_numbers = #tpu.dot_dimension_numbers<[1], [0], [0], [1], [0, 0, 1, 1], [], []>} : vector<2x128xf32>, vector<128x128xf32>, vector<2x128xf32> -> vector<2x128xf32>
    %263 = arith.addf %260, %262 : vector<2x128xf32>
    %264 = arith.negf %263 : vector<2x128xf32>
    %265 = math.exp %264 : vector<2x128xf32>
    %cst_154 = arith.constant 1.000000e+00 : f32
    %266 = vector.broadcast %cst_154 : f32 to vector<2x128xf32>
    %267 = arith.addf %266, %265 : vector<2x128xf32>
    %268 = arith.divf %266, %267 : vector<2x128xf32>
    %cst_155 = arith.constant 2.000000e+00 : f32
    %269 = vector.broadcast %cst_155 : f32 to vector<2x128xf32>
    %270 = arith.mulf %269, %268 : vector<2x128xf32>
    %cst_156 = arith.constant 1.000000e+00 : f32
    %271 = vector.broadcast %cst_156 : f32 to vector<2x128xf32>
    %272 = arith.subf %270, %271 : vector<2x128xf32>
    %273 = arith.select %5, %272, %268 : vector<2x128xi1>, vector<2x128xf32>
    %c96_i32_157 = arith.constant 96 : i32
    %274 = tpu.dynamic_rotate %273 by %c96_i32_157 dim 1 : vector<2x128xf32>, i32 -> vector<2x128xf32>
    %c64_i32_158 = arith.constant 64 : i32
    %275 = tpu.dynamic_rotate %273 by %c64_i32_158 dim 1 : vector<2x128xf32>, i32 -> vector<2x128xf32>
    %c32_i32_159 = arith.constant 32 : i32
    %276 = tpu.dynamic_rotate %273 by %c32_i32_159 dim 1 : vector<2x128xf32>, i32 -> vector<2x128xf32>
    %277 = arith.mulf %274, %256 : vector<2x128xf32>
    %278 = arith.mulf %273, %275 : vector<2x128xf32>
    %279 = arith.addf %277, %278 : vector<2x128xf32>
    %280 = math.tanh %279 : vector<2x128xf32>
    %281 = arith.mulf %276, %280 : vector<2x128xf32>
    %c4_160 = arith.constant 4 : index
    %c0_161 = arith.constant 0 : index
    %282 = vector.load %arg14[%c4_160, %c0_161] : memref<16x128xf32, #tpu.memory_space<vmem>>, vector<2x128xf32>
    tpu.vector_store %arg14[%c4_160, %c0_161], %281 {strides = array<i32>} : memref<16x128xf32, #tpu.memory_space<vmem>>, vector<2x128xf32>,
    %c6_162 = arith.constant 6 : index
    %c0_163 = arith.constant 0 : index
    %283 = vector.load %arg13[%c6_162, %c0_163] : memref<16x128xf32, #tpu.memory_space<vmem>>, vector<2x128xf32>
    %c0_164 = arith.constant 0 : index
    %c0_165 = arith.constant 0 : index
    %284 = vector.load %arg7[%c0_164, %c0_165] : memref<128x128xf32, #tpu.memory_space<vmem>>, vector<128x128xf32>
    %cst_166 = arith.constant dense<0.000000e+00> : vector<2x128xf32>
    %285 = tpu.matmul %281, %284, %cst_166 {dimension_numbers = #tpu.dot_dimension_numbers<[1], [0], [0], [1], [0, 0, 1, 1], [], []>} : vector<2x128xf32>, vector<128x128xf32>, vector<2x128xf32> -> vector<2x128xf32>
    %286 = arith.addf %283, %285 : vector<2x128xf32>
    %287 = arith.negf %286 : vector<2x128xf32>
    %288 = math.exp %287 : vector<2x128xf32>
    %cst_167 = arith.constant 1.000000e+00 : f32
    %289 = vector.broadcast %cst_167 : f32 to vector<2x128xf32>
    %290 = arith.addf %289, %288 : vector<2x128xf32>
    %291 = arith.divf %289, %290 : vector<2x128xf32>
    %cst_168 = arith.constant 2.000000e+00 : f32
    %292 = vector.broadcast %cst_168 : f32 to vector<2x128xf32>
    %293 = arith.mulf %292, %291 : vector<2x128xf32>
    %cst_169 = arith.constant 1.000000e+00 : f32
    %294 = vector.broadcast %cst_169 : f32 to vector<2x128xf32>
    %295 = arith.subf %293, %294 : vector<2x128xf32>
    %296 = arith.select %5, %295, %291 : vector<2x128xi1>, vector<2x128xf32>
    %c96_i32_170 = arith.constant 96 : i32
    %297 = tpu.dynamic_rotate %296 by %c96_i32_170 dim 1 : vector<2x128xf32>, i32 -> vector<2x128xf32>
    %c64_i32_171 = arith.constant 64 : i32
    %298 = tpu.dynamic_rotate %296 by %c64_i32_171 dim 1 : vector<2x128xf32>, i32 -> vector<2x128xf32>
    %c32_i32_172 = arith.constant 32 : i32
    %299 = tpu.dynamic_rotate %296 by %c32_i32_172 dim 1 : vector<2x128xf32>, i32 -> vector<2x128xf32>
    %300 = arith.mulf %297, %279 : vector<2x128xf32>
    %301 = arith.mulf %296, %298 : vector<2x128xf32>
    %302 = arith.addf %300, %301 : vector<2x128xf32>
    %303 = math.tanh %302 : vector<2x128xf32>
    %304 = arith.mulf %299, %303 : vector<2x128xf32>
    %c6_173 = arith.constant 6 : index
    %c0_174 = arith.constant 0 : index
    %305 = vector.load %arg14[%c6_173, %c0_174] : memref<16x128xf32, #tpu.memory_space<vmem>>, vector<2x128xf32>
    tpu.vector_store %arg14[%c6_173, %c0_174], %304 {strides = array<i32>} : memref<16x128xf32, #tpu.memory_space<vmem>>, vector<2x128xf32>,
    %c8_175 = arith.constant 8 : index
    %c0_176 = arith.constant 0 : index
    %306 = vector.load %arg13[%c8_175, %c0_176] : memref<16x128xf32, #tpu.memory_space<vmem>>, vector<2x128xf32>
    %c0_177 = arith.constant 0 : index
    %c0_178 = arith.constant 0 : index
    %307 = vector.load %arg7[%c0_177, %c0_178] : memref<128x128xf32, #tpu.memory_space<vmem>>, vector<128x128xf32>
    %cst_179 = arith.constant dense<0.000000e+00> : vector<2x128xf32>
    %308 = tpu.matmul %304, %307, %cst_179 {dimension_numbers = #tpu.dot_dimension_numbers<[1], [0], [0], [1], [0, 0, 1, 1], [], []>} : vector<2x128xf32>, vector<128x128xf32>, vector<2x128xf32> -> vector<2x128xf32>
    %309 = arith.addf %306, %308 : vector<2x128xf32>
    %310 = arith.negf %309 : vector<2x128xf32>
    %311 = math.exp %310 : vector<2x128xf32>
    %cst_180 = arith.constant 1.000000e+00 : f32
    %312 = vector.broadcast %cst_180 : f32 to vector<2x128xf32>
    %313 = arith.addf %312, %311 : vector<2x128xf32>
    %314 = arith.divf %312, %313 : vector<2x128xf32>
    %cst_181 = arith.constant 2.000000e+00 : f32
    %315 = vector.broadcast %cst_181 : f32 to vector<2x128xf32>
    %316 = arith.mulf %315, %314 : vector<2x128xf32>
    %cst_182 = arith.constant 1.000000e+00 : f32
    %317 = vector.broadcast %cst_182 : f32 to vector<2x128xf32>
    %318 = arith.subf %316, %317 : vector<2x128xf32>
    %319 = arith.select %5, %318, %314 : vector<2x128xi1>, vector<2x128xf32>
    %c96_i32_183 = arith.constant 96 : i32
    %320 = tpu.dynamic_rotate %319 by %c96_i32_183 dim 1 : vector<2x128xf32>, i32 -> vector<2x128xf32>
    %c64_i32_184 = arith.constant 64 : i32
    %321 = tpu.dynamic_rotate %319 by %c64_i32_184 dim 1 : vector<2x128xf32>, i32 -> vector<2x128xf32>
    %c32_i32_185 = arith.constant 32 : i32
    %322 = tpu.dynamic_rotate %319 by %c32_i32_185 dim 1 : vector<2x128xf32>, i32 -> vector<2x128xf32>
    %323 = arith.mulf %320, %302 : vector<2x128xf32>
    %324 = arith.mulf %319, %321 : vector<2x128xf32>
    %325 = arith.addf %323, %324 : vector<2x128xf32>
    %326 = math.tanh %325 : vector<2x128xf32>
    %327 = arith.mulf %322, %326 : vector<2x128xf32>
    %c8_186 = arith.constant 8 : index
    %c0_187 = arith.constant 0 : index
    %328 = vector.load %arg14[%c8_186, %c0_187] : memref<16x128xf32, #tpu.memory_space<vmem>>, vector<2x128xf32>
    tpu.vector_store %arg14[%c8_186, %c0_187], %327 {strides = array<i32>} : memref<16x128xf32, #tpu.memory_space<vmem>>, vector<2x128xf32>,
    %c10_188 = arith.constant 10 : index
    %c0_189 = arith.constant 0 : index
    %329 = vector.load %arg13[%c10_188, %c0_189] : memref<16x128xf32, #tpu.memory_space<vmem>>, vector<2x128xf32>
    %c0_190 = arith.constant 0 : index
    %c0_191 = arith.constant 0 : index
    %330 = vector.load %arg7[%c0_190, %c0_191] : memref<128x128xf32, #tpu.memory_space<vmem>>, vector<128x128xf32>
    %cst_192 = arith.constant dense<0.000000e+00> : vector<2x128xf32>
    %331 = tpu.matmul %327, %330, %cst_192 {dimension_numbers = #tpu.dot_dimension_numbers<[1], [0], [0], [1], [0, 0, 1, 1], [], []>} : vector<2x128xf32>, vector<128x128xf32>, vector<2x128xf32> -> vector<2x128xf32>
    %332 = arith.addf %329, %331 : vector<2x128xf32>
    %333 = arith.negf %332 : vector<2x128xf32>
    %334 = math.exp %333 : vector<2x128xf32>
    %cst_193 = arith.constant 1.000000e+00 : f32
    %335 = vector.broadcast %cst_193 : f32 to vector<2x128xf32>
    %336 = arith.addf %335, %334 : vector<2x128xf32>
    %337 = arith.divf %335, %336 : vector<2x128xf32>
    %cst_194 = arith.constant 2.000000e+00 : f32
    %338 = vector.broadcast %cst_194 : f32 to vector<2x128xf32>
    %339 = arith.mulf %338, %337 : vector<2x128xf32>
    %cst_195 = arith.constant 1.000000e+00 : f32
    %340 = vector.broadcast %cst_195 : f32 to vector<2x128xf32>
    %341 = arith.subf %339, %340 : vector<2x128xf32>
    %342 = arith.select %5, %341, %337 : vector<2x128xi1>, vector<2x128xf32>
    %c96_i32_196 = arith.constant 96 : i32
    %343 = tpu.dynamic_rotate %342 by %c96_i32_196 dim 1 : vector<2x128xf32>, i32 -> vector<2x128xf32>
    %c64_i32_197 = arith.constant 64 : i32
    %344 = tpu.dynamic_rotate %342 by %c64_i32_197 dim 1 : vector<2x128xf32>, i32 -> vector<2x128xf32>
    %c32_i32_198 = arith.constant 32 : i32
    %345 = tpu.dynamic_rotate %342 by %c32_i32_198 dim 1 : vector<2x128xf32>, i32 -> vector<2x128xf32>
    %346 = arith.mulf %343, %325 : vector<2x128xf32>
    %347 = arith.mulf %342, %344 : vector<2x128xf32>
    %348 = arith.addf %346, %347 : vector<2x128xf32>
    %349 = math.tanh %348 : vector<2x128xf32>
    %350 = arith.mulf %345, %349 : vector<2x128xf32>
    %c10_199 = arith.constant 10 : index
    %c0_200 = arith.constant 0 : index
    %351 = vector.load %arg14[%c10_199, %c0_200] : memref<16x128xf32, #tpu.memory_space<vmem>>, vector<2x128xf32>
    tpu.vector_store %arg14[%c10_199, %c0_200], %350 {strides = array<i32>} : memref<16x128xf32, #tpu.memory_space<vmem>>, vector<2x128xf32>,
    %c12_201 = arith.constant 12 : index
    %c0_202 = arith.constant 0 : index
    %352 = vector.load %arg13[%c12_201, %c0_202] : memref<16x128xf32, #tpu.memory_space<vmem>>, vector<2x128xf32>
    %c0_203 = arith.constant 0 : index
    %c0_204 = arith.constant 0 : index
    %353 = vector.load %arg7[%c0_203, %c0_204] : memref<128x128xf32, #tpu.memory_space<vmem>>, vector<128x128xf32>
    %cst_205 = arith.constant dense<0.000000e+00> : vector<2x128xf32>
    %354 = tpu.matmul %350, %353, %cst_205 {dimension_numbers = #tpu.dot_dimension_numbers<[1], [0], [0], [1], [0, 0, 1, 1], [], []>} : vector<2x128xf32>, vector<128x128xf32>, vector<2x128xf32> -> vector<2x128xf32>
    %355 = arith.addf %352, %354 : vector<2x128xf32>
    %356 = arith.negf %355 : vector<2x128xf32>
    %357 = math.exp %356 : vector<2x128xf32>
    %cst_206 = arith.constant 1.000000e+00 : f32
    %358 = vector.broadcast %cst_206 : f32 to vector<2x128xf32>
    %359 = arith.addf %358, %357 : vector<2x128xf32>
    %360 = arith.divf %358, %359 : vector<2x128xf32>
    %cst_207 = arith.constant 2.000000e+00 : f32
    %361 = vector.broadcast %cst_207 : f32 to vector<2x128xf32>
    %362 = arith.mulf %361, %360 : vector<2x128xf32>
    %cst_208 = arith.constant 1.000000e+00 : f32
    %363 = vector.broadcast %cst_208 : f32 to vector<2x128xf32>
    %364 = arith.subf %362, %363 : vector<2x128xf32>
    %365 = arith.select %5, %364, %360 : vector<2x128xi1>, vector<2x128xf32>
    %c96_i32_209 = arith.constant 96 : i32
    %366 = tpu.dynamic_rotate %365 by %c96_i32_209 dim 1 : vector<2x128xf32>, i32 -> vector<2x128xf32>
    %c64_i32_210 = arith.constant 64 : i32
    %367 = tpu.dynamic_rotate %365 by %c64_i32_210 dim 1 : vector<2x128xf32>, i32 -> vector<2x128xf32>
    %c32_i32_211 = arith.constant 32 : i32
    %368 = tpu.dynamic_rotate %365 by %c32_i32_211 dim 1 : vector<2x128xf32>, i32 -> vector<2x128xf32>
    %369 = arith.mulf %366, %348 : vector<2x128xf32>
    %370 = arith.mulf %365, %367 : vector<2x128xf32>
    %371 = arith.addf %369, %370 : vector<2x128xf32>
    %372 = math.tanh %371 : vector<2x128xf32>
    %373 = arith.mulf %368, %372 : vector<2x128xf32>
    %c12_212 = arith.constant 12 : index
    %c0_213 = arith.constant 0 : index
    %374 = vector.load %arg14[%c12_212, %c0_213] : memref<16x128xf32, #tpu.memory_space<vmem>>, vector<2x128xf32>
    tpu.vector_store %arg14[%c12_212, %c0_213], %373 {strides = array<i32>} : memref<16x128xf32, #tpu.memory_space<vmem>>, vector<2x128xf32>,
    %c14_214 = arith.constant 14 : index
    %c0_215 = arith.constant 0 : index
    %375 = vector.load %arg13[%c14_214, %c0_215] : memref<16x128xf32, #tpu.memory_space<vmem>>, vector<2x128xf32>
    %c0_216 = arith.constant 0 : index
    %c0_217 = arith.constant 0 : index
    %376 = vector.load %arg7[%c0_216, %c0_217] : memref<128x128xf32, #tpu.memory_space<vmem>>, vector<128x128xf32>
    %cst_218 = arith.constant dense<0.000000e+00> : vector<2x128xf32>
    %377 = tpu.matmul %373, %376, %cst_218 {dimension_numbers = #tpu.dot_dimension_numbers<[1], [0], [0], [1], [0, 0, 1, 1], [], []>} : vector<2x128xf32>, vector<128x128xf32>, vector<2x128xf32> -> vector<2x128xf32>
    %378 = arith.addf %375, %377 : vector<2x128xf32>
    %379 = arith.negf %378 : vector<2x128xf32>
    %380 = math.exp %379 : vector<2x128xf32>
    %cst_219 = arith.constant 1.000000e+00 : f32
    %381 = vector.broadcast %cst_219 : f32 to vector<2x128xf32>
    %382 = arith.addf %381, %380 : vector<2x128xf32>
    %383 = arith.divf %381, %382 : vector<2x128xf32>
    %cst_220 = arith.constant 2.000000e+00 : f32
    %384 = vector.broadcast %cst_220 : f32 to vector<2x128xf32>
    %385 = arith.mulf %384, %383 : vector<2x128xf32>
    %cst_221 = arith.constant 1.000000e+00 : f32
    %386 = vector.broadcast %cst_221 : f32 to vector<2x128xf32>
    %387 = arith.subf %385, %386 : vector<2x128xf32>
    %388 = arith.select %5, %387, %383 : vector<2x128xi1>, vector<2x128xf32>
    %c96_i32_222 = arith.constant 96 : i32
    %389 = tpu.dynamic_rotate %388 by %c96_i32_222 dim 1 : vector<2x128xf32>, i32 -> vector<2x128xf32>
    %c64_i32_223 = arith.constant 64 : i32
    %390 = tpu.dynamic_rotate %388 by %c64_i32_223 dim 1 : vector<2x128xf32>, i32 -> vector<2x128xf32>
    %c32_i32_224 = arith.constant 32 : i32
    %391 = tpu.dynamic_rotate %388 by %c32_i32_224 dim 1 : vector<2x128xf32>, i32 -> vector<2x128xf32>
    %392 = arith.mulf %389, %371 : vector<2x128xf32>
    %393 = arith.mulf %388, %390 : vector<2x128xf32>
    %394 = arith.addf %392, %393 : vector<2x128xf32>
    %395 = math.tanh %394 : vector<2x128xf32>
    %396 = arith.mulf %391, %395 : vector<2x128xf32>
    %c14_225 = arith.constant 14 : index
    %c0_226 = arith.constant 0 : index
    %397 = vector.load %arg14[%c14_225, %c0_226] : memref<16x128xf32, #tpu.memory_space<vmem>>, vector<2x128xf32>
    tpu.vector_store %arg14[%c14_225, %c0_226], %396 {strides = array<i32>} : memref<16x128xf32, #tpu.memory_space<vmem>>, vector<2x128xf32>,
    %c0_227 = arith.constant 0 : index
    %c0_228 = arith.constant 0 : index
    %398 = vector.load %arg14[%c0_227, %c0_228] : memref<16x128xf32, #tpu.memory_space<vmem>>, vector<16x128xf32>
    %c0_229 = arith.constant 0 : index
    %c0_230 = arith.constant 0 : index
    %399 = vector.load %arg9[%c0_229, %c0_230] : memref<128x4xf32, #tpu.memory_space<vmem>>, vector<128x4xf32>
    %cst_231 = arith.constant dense<0.000000e+00> : vector<16x4xf32>
    %400 = tpu.matmul %398, %399, %cst_231 {dimension_numbers = #tpu.dot_dimension_numbers<[1], [0], [0], [1], [0, 0, 1, 1], [], []>} : vector<16x128xf32>, vector<128x4xf32>, vector<16x4xf32> -> vector<16x4xf32>
    %c0_232 = arith.constant 0 : index
    %c0_233 = arith.constant 0 : index
    %401 = vector.load %arg10[%c0_232, %c0_233] : memref<8x16xf32, #tpu.memory_space<vmem>>, vector<8x16xf32>
    %cst_234 = arith.constant dense<0.000000e+00> : vector<8x4xf32>
    %402 = tpu.matmul %401, %400, %cst_234 {dimension_numbers = #tpu.dot_dimension_numbers<[1], [0], [0], [1], [0, 0, 1, 1], [], []>} : vector<8x16xf32>, vector<16x4xf32>, vector<8x4xf32> -> vector<8x4xf32>
    %c0_235 = arith.constant 0 : index
    %c0_236 = arith.constant 0 : index
    %403 = vector.load %arg11[%c0_235, %c0_236] : memref<8x4xf32, #tpu.memory_space<vmem>>, vector<8x4xf32>
    %404 = arith.addf %402, %403 : vector<8x4xf32>
    %c0_237 = arith.constant 0 : index
    %c0_238 = arith.constant 0 : index
    %405 = vector.load %arg12[%c0_237, %c0_238] : memref<8x4xf32, #tpu.memory_space<vmem>>, vector<8x4xf32>
    tpu.vector_store %arg12[%c0_237, %c0_238], %404 {strides = array<i32>} : memref<8x4xf32, #tpu.memory_space<vmem>>, vector<8x4xf32>,
    return
  }
}

</mosaic_0001>

<bundles_post_ra>
// kernel: lstm_forward.1
= control target key start
LH: loop header
LB: loop body
LE: loop exit
PB: predicated region body
PF: predicated region fallthrough
CT: control target
= control target key end

     0   :  { %17 = vsyncpa [#allocation5], 0  ;;  %s4461_s0 = inlined_call_operand.vmem [shape: f32[16,128], index: 0, kind: input, shape index: {}]   ;;  %s4462_s1 = inlined_call_operand.vmem [shape: f32[2,2,128], index: 1, kind: input, shape index: {}]   ;;  %s4463_s2 = inlined_call_operand.vmem [shape: f32[2,2,128], index: 2, kind: input, shape index: {}]   ;;  %s4464_s3 = inlined_call_operand.vmem [shape: f32[128,128], index: 3, kind: input, shape index: {}]   ;;  %s4465_s4 = inlined_call_operand.vmem [shape: f32[128,128], index: 4, kind: input, shape index: {}]   ;;  %s4466_s5 = inlined_call_operand.vmem [shape: f32[1,128], index: 5, kind: input, shape index: {}]   ;;  %s4467_s6 = inlined_call_operand.vmem [shape: f32[128,128], index: 6, kind: input, shape index: {}]   ;;  %s4468_s7 = inlined_call_operand.hbm [shape: f32[128,128], index: 7, kind: input, shape index: {}]   ;;  %s4469_s8 = inlined_call_operand.hbm [shape: f32[1,128], index: 8, kind: input, shape index: {}]   ;;  %s4470_s9 = inlined_call_operand.vmem [shape: f32[128,4], index: 9, kind: input, shape index: {}]   ;;  %s4471_s10 = inlined_call_operand.vmem [shape: f32[8,16], index: 10, kind: input, shape index: {}]   ;;  %s4472_s11 = inlined_call_operand.vmem [shape: f32[8,4], index: 11, kind: input, shape index: {}]   ;;  %s4473_s12 = inlined_call_operand.hbm [shape: f32[8,4], index: 12, kind: output, shape index: {}]  }
   0x1   :  { %18 = vsyncpa [#allocation8], 0 }
   0x2   :  { %19 = vsyncpa [#allocation6], 0  ;;  %s3424_s21 = smov [#allocation4]  }
   0x3   :  { %s39_s22 = sshll.u32 %s3424_s21, 4  ;;  %s40_s22 = int_to_ptr.vmem [resolvable:$true] %s39_s22 }
   0x4   :  { %s3366_s23 = scalar_lea.vmem %s40_s22, 2048  ;;  %p3371_p1 = scmp.lt.s32.totalorder %s40_s22, %s40_s22 }
   0x5   :  { %p3367_p0 = scmp.ne.s32.totalorder %s40_s22, %s3366_s23  ;;  %p3372_p2 = scmp.lt.s32.totalorder %s3366_s23, %s3366_s23 }
   0x7   :  { %p3373_p3 = por %p3372_p2, %p3371_p1 }
   0x9   :  { %p3374_p4 = pnand %p3373_p3, %p3367_p0 }
   0xb   :  { %3377 = shalt.err (!%p3374_p4)
}
   0xc   :  { %s3425_s24 = smov 128   ;;  %s3426_s25 = smov 8  }
   0xd   :  { %45 = dma.hbm_to_vmem [thread:$0]  %s4468_s7, 2048, %s40_s22, [#allocation5], %s3425_s24, %s3425_s24, %s3426_s25  }
   0xe   :  { %s3427_s28 = smov [#allocation7]  }
   0xf   :  { %s52_s29 = sshll.u32 %s3427_s28, 4  ;;  %s53_s29 = int_to_ptr.vmem [resolvable:$true] %s52_s29 }
  0x10   :  { %s3386_s30 = scalar_lea.vmem %s53_s29, 16  ;;  %s3390_s13 = scalar_lea.vmem %s53_s29, 32 }
  0x11   :  { %p3387_p5 = scmp.ne.s32.totalorder %s53_s29, %s3386_s30  ;;  %p3391_p6 = scmp.lt.s32.totalorder %s53_s29, %s53_s29 }
  0x12   :  { %p3392_p7 = scmp.lt.s32.totalorder %s3390_s13, %s3386_s30 }
  0x14   :  { %p3393_p8 = por %p3392_p7, %p3391_p6 }
  0x16   :  { %p3394_p9 = pnand %p3393_p8, %p3387_p5 }
  0x18   :  { %3397 = shalt.err (!%p3394_p9)
}
  0x19   :  { %55 = dma.hbm_to_vmem [thread:$0]  %s4469_s8, 16, %s53_s29, [#allocation8]  }
  0x1a   :  { %3418 = dma.done.wait [#allocation5], 2048  }
  0x1b   :  { %3419 = vsyncadd [#allocation5], 4294965248 }
  0x1c   :  { %3420 = dma.done.wait [#allocation8], 16  }
  0x1d   :  { %3421 = vsyncadd [#allocation8], 4294967280  ;;  %v3428_v0 = vmov 0.0   ;;  %vm3429_vm0 = vmmov 0   ;;  %v90_v1 = vld [vmem:[%s4464_s3 + $0x78] sm:$0xff]  ;;  %v89_v2 = vld [vmem:[%s4464_s3 + $0x70] sm:$0xff]  ;;  %v68_v48 = vlaneseq }
  0x1e   :  { %2615 = vmatprep.subr.mxu1 %v3428_v0  ;;  %2647 = vmatprep.mubr.msk.f32.mxu1 %vm3429_vm0, %v3428_v0  ;;  %v88_v3 = vld [vmem:[%s4464_s3 + $0x68] sm:$0xff]  ;;  %v3520_v4 = vld [vmem:[%s4465_s4 + $0x78] sm:$0xff]  ;;  %v3525_v5 = vld [vmem:[%s4465_s4 + $0x70] sm:$0xff]  ;;  %s3431_s24 = smov 96   ;;  %s3432_s25 = smov 64   ;;  %vm2122_vm4 = vcmask 130048  }
  0x1f   :  { %2580 = vmatprep.subr.mxu0 %v90_v1  ;;  %2616 = vmatpush3.msra.mxu1 %v3520_v4  ;;  %v87_v6 = vld [vmem:[%s4464_s3 + $0x60] sm:$0xff]  ;;  %v3535_v7 = vld [vmem:[%s4465_s4 + $0x68] sm:$0xff]  ;;  %v86_v8 = vld [vmem:[%s4464_s3 + $0x58] sm:$0xff]  ;;  %v69_v49 = vand.u32 127, %v68_v48  ;;  %s3433_s19 = smov [#allocation9]   ;;  %vm2196_vm5 = vcmask 31744  }
  0x20   :  { %2581 = vmatpush3.msra.mxu0 %v90_v1  ;;  %2617 = vmatprep.subr.mxu1 %v3428_v0  ;;  %v3545_v9 = vld [vmem:[%s4465_s4 + $0x60] sm:$0xff]  ;;  %v85_v10 = vld [vmem:[%s4464_s3 + $0x50] sm:$0xff]  ;;  %v3555_v11 = vld [vmem:[%s4465_s4 + $0x58] sm:$0xff] }
  0x21   :  { %2582 = vmatprep.subr.mxu0 %v89_v2  ;;  %2618 = vmatpush3.msra.mxu1 %v3525_v5  ;;  %v84_v12 = vld [vmem:[%s4464_s3 + $0x48] sm:$0xff]  ;;  %v3565_v13 = vld [vmem:[%s4465_s4 + $0x50] sm:$0xff]  ;;  %v83_v14 = vld [vmem:[%s4464_s3 + $0x40] sm:$0xff]  ;;  %vm70_vm1 = vcmp.ge.s32.totalorder %v69_v49, 64  ;;  %vm71_vm2 = vcmp.lt.s32.totalorder %v69_v49, 96 }
  0x22   :  { %2583 = vmatpush3.msra.mxu0 %v89_v2  ;;  %2619 = vmatprep.subr.mxu1 %v3428_v0  ;;  %v3575_v15 = vld [vmem:[%s4465_s4 + $0x48] sm:$0xff]  ;;  %v82_v16 = vld [vmem:[%s4464_s3 + $0x38] sm:$0xff]  ;;  %v3585_v17 = vld [vmem:[%s4465_s4 + $0x40] sm:$0xff] }
  0x23   :  { %2584 = vmatprep.subr.mxu0 %v88_v3  ;;  %2620 = vmatpush3.msra.mxu1 %v3535_v7  ;;  %v81_v18 = vld [vmem:[%s4464_s3 + $0x30] sm:$0xff]  ;;  %v3595_v19 = vld [vmem:[%s4465_s4 + $0x38] sm:$0xff]  ;;  %v80_v20 = vld [vmem:[%s4464_s3 + $0x28] sm:$0xff] }
  0x24   :  { %2585 = vmatpush3.msra.mxu0 %v88_v3  ;;  %2621 = vmatprep.subr.mxu1 %v3428_v0  ;;  %v3605_v21 = vld [vmem:[%s4465_s4 + $0x30] sm:$0xff]  ;;  %v79_v22 = vld [vmem:[%s4464_s3 + $0x20] sm:$0xff]  ;;  %v3619_v24 = vld [vmem:[%s4465_s4 + $0x28] sm:$0xff] }
  0x25   :  { %2586 = vmatprep.subr.mxu0 %v87_v6  ;;  %2622 = vmatpush3.msra.mxu1 %v3545_v9  ;;  %v73_v23 = vld [vmem:[%s4461_s0] sm:$0xff]  ;;  %v78_v25 = vld [vmem:[%s4464_s3 + $0x18] sm:$0xff]  ;;  %v77_v27 = vld [vmem:[%s4464_s3 + $0x10] sm:$0xff] }
  0x26   :  { %2587 = vmatpush3.msra.mxu0 %v87_v6  ;;  %2623 = vmatprep.subr.mxu1 %v3428_v0  ;;  %v3628_v26 = vld [vmem:[%s4465_s4 + $0x20] sm:$0xff]  ;;  %v3638_v28 = vld [vmem:[%s4465_s4 + $0x18] sm:$0xff]  ;;  %v76_v29 = vld [vmem:[%s4464_s3 + $0x8] sm:$0xff] }
  0x27   :  { %2588 = vmatprep.subr.mxu0 %v86_v8  ;;  %2624 = vmatpush3.msra.mxu1 %v3555_v11  ;;  %v3648_v30 = vld [vmem:[%s4465_s4 + $0x10] sm:$0xff]  ;;  %v75_v31 = vld [vmem:[%s4464_s3] sm:$0xff]  ;;  %v3658_v32 = vld [vmem:[%s4465_s4 + $0x8] sm:$0xff] }
  0x28   :  { %2589 = vmatpush3.msra.mxu0 %v86_v8  ;;  %2625 = vmatprep.subr.mxu1 %v3428_v0  ;;  %v74_v33 = vld [vmem:[%s4461_s0 + $0x8] sm:$0xff]  ;;  %v3668_v34 = vld [vmem:[%s4465_s4] sm:$0xff]  ;;  %vm3749_vm3 = vmand %vm70_vm1, %vm71_vm2 }
  0x29   :  { %2590 = vmatprep.subr.mxu0 %v85_v10  ;;  %2626 = vmatpush3.msra.mxu1 %v3565_v13  ;;  %v175_v35 = vld [vmem:[%s4462_s1] sm:$0x3]  ;;  %v2034_v52 = vld [vmem:[%s4470_s9 + $0x28] sm:$0xff] }
  0x2a   :  { %2591 = vmatpush3.msra.mxu0 %v85_v10  ;;  %2627 = vmatprep.subr.mxu1 %v3428_v0  ;;  %v2214_v36 = vld [vmem:[%s4466_s5] ss:$0 sm:$0xff]  ;;  %s3430_s5 = smov 32  }
  0x2b   :  { %2592 = vmatprep.subr.mxu0 %v84_v12  ;;  %2628 = vmatpush3.msra.mxu1 %v3575_v15  ;;  %v176_v56 = vld [vmem:[%s4463_s2] sm:$0x3] }
  0x2c   :  { %2593 = vmatpush3.msra.mxu0 %v84_v12  ;;  %2629 = vmatprep.subr.mxu1 %v3428_v0 }
  0x2d   :  { %2594 = vmatprep.subr.mxu0 %v83_v14  ;;  %2630 = vmatpush3.msra.mxu1 %v3585_v17 }
  0x2e   :  { %2595 = vmatpush3.msra.mxu0 %v83_v14  ;;  %2631 = vmatprep.subr.mxu1 %v3428_v0 }
  0x2f   :  { %2596 = vmatprep.subr.mxu0 %v82_v16  ;;  %2632 = vmatpush3.msra.mxu1 %v3595_v19 }
  0x30   :  { %2597 = vmatpush3.msra.mxu0 %v82_v16  ;;  %2633 = vmatprep.subr.mxu1 %v3428_v0 }
  0x31   :  { %2598 = vmatprep.subr.mxu0 %v81_v18  ;;  %2634 = vmatpush3.msra.mxu1 %v3605_v21 }
  0x32   :  { %2599 = vmatpush3.msra.mxu0 %v81_v18  ;;  %2635 = vmatprep.subr.mxu1 %v3428_v0 }
  0x33   :  { %2600 = vmatprep.subr.mxu0 %v80_v20  ;;  %2612 = vmatprep.mubr.f32.mxu0 %v73_v23 }
  0x34   :  { %2601 = vmatpush3.msra.mxu0 %v80_v20  ;;  %2636 = vmatpush3.msra.mxu1 %v3619_v24 }
  0x35   :  { %2602 = vmatprep.subr.mxu0 %v79_v22  ;;  %2637 = vmatprep.subr.mxu1 %v3428_v0 }
  0x36   :  { %2603 = vmatpush3.msra.mxu0 %v79_v22  ;;  %2638 = vmatpush3.msra.mxu1 %v3628_v26 }
  0x37   :  { %2604 = vmatprep.subr.mxu0 %v78_v25  ;;  %2639 = vmatprep.subr.mxu1 %v3428_v0 }
  0x38   :  { %2605 = vmatpush3.msra.mxu0 %v78_v25  ;;  %2640 = vmatpush3.msra.mxu1 %v3638_v28 }
  0x39   :  { %2606 = vmatprep.subr.mxu0 %v77_v27  ;;  %2641 = vmatprep.subr.mxu1 %v3428_v0 }
  0x3a   :  { %2607 = vmatpush3.msra.mxu0 %v77_v27  ;;  %2642 = vmatpush3.msra.mxu1 %v3648_v30 }
  0x3b   :  { %2608 = vmatprep.subr.mxu0 %v76_v29  ;;  %2643 = vmatprep.subr.mxu1 %v3428_v0 }
  0x3c   :  { %2609 = vmatpush3.msra.mxu0 %v76_v29  ;;  %2644 = vmatpush3.msra.mxu1 %v3658_v32 }
  0x3d   :  { %2610 = vmatprep.subr.mxu0 %v75_v31  ;;  %2645 = vmatprep.subr.mxu1 %v3428_v0 }
  0x3e   :  { %2611 = vmatpush3.msra.mxu0 %v75_v31  ;;  %2646 = vmatpush3.msra.mxu1 %v3668_v34 }
  0x3f   :  { %2613 = vmatmul.mubr.f32.vlgmr.msra.gmra.mxu0 %v74_v33  ;;  %2650 = vmatprep.subr.mxu0 %v3428_v0 }
  0x40   :  { %2648 = vmatmul.mubr.f32.vlgmr.msra.gmra.mxu1 %v175_v35  ;;  %2651 = vmatpush3.msra.mxu0 %v3520_v4 }
  0x41   :  { %2652 = vmatprep.subr.mxu0 %v3428_v0  ;;  %2682 = vmatprep.mubr.msk.f32.mxu0 %vm3429_vm0, %v3428_v0 }
  0x42   :  { %2653 = vmatpush3.msra.mxu0 %v3525_v5  ;;  %2685 = vmatprep.subr.mxu1 %v3428_v0 }
  0x43   :  { %2654 = vmatprep.subr.mxu0 %v3428_v0  ;;  %2686 = vmatpush3.msra.mxu1 %v3520_v4 }
  0x44   :  { %2655 = vmatpush3.msra.mxu0 %v3535_v7  ;;  %2687 = vmatprep.subr.mxu1 %v3428_v0 }
  0x45   :  { %2656 = vmatprep.subr.mxu0 %v3428_v0  ;;  %2688 = vmatpush3.msra.mxu1 %v3525_v5 }
  0x46   :  { %2657 = vmatpush3.msra.mxu0 %v3545_v9  ;;  %2689 = vmatprep.subr.mxu1 %v3428_v0 }
  0x47   :  { %2658 = vmatprep.subr.mxu0 %v3428_v0  ;;  %2690 = vmatpush3.msra.mxu1 %v3535_v7 }
  0x48   :  { %2659 = vmatpush3.msra.mxu0 %v3555_v11  ;;  %2691 = vmatprep.subr.mxu1 %v3428_v0 }
  0x49   :  { %2660 = vmatprep.subr.mxu0 %v3428_v0  ;;  %2692 = vmatpush3.msra.mxu1 %v3545_v9 }
  0x4a   :  { %2661 = vmatpush3.msra.mxu0 %v3565_v13  ;;  %2693 = vmatprep.subr.mxu1 %v3428_v0 }
  0x4b   :  { %2662 = vmatprep.subr.mxu0 %v3428_v0  ;;  %2694 = vmatpush3.msra.mxu1 %v3555_v11 }
  0x4c   :  { %2663 = vmatpush3.msra.mxu0 %v3575_v15  ;;  %2695 = vmatprep.subr.mxu1 %v3428_v0 }
  0x4d   :  { %2664 = vmatprep.subr.mxu0 %v3428_v0  ;;  %2696 = vmatpush3.msra.mxu1 %v3565_v13 }
  0x4e   :  { %2665 = vmatpush3.msra.mxu0 %v3585_v17  ;;  %2697 = vmatprep.subr.mxu1 %v3428_v0 }
  0x4f   :  { %2666 = vmatprep.subr.mxu0 %v3428_v0  ;;  %2698 = vmatpush3.msra.mxu1 %v3575_v15 }
  0x50   :  { %2667 = vmatpush3.msra.mxu0 %v3595_v19  ;;  %2699 = vmatprep.subr.mxu1 %v3428_v0 }
  0x51   :  { %2668 = vmatprep.subr.mxu0 %v3428_v0  ;;  %2700 = vmatpush3.msra.mxu1 %v3585_v17 }
  0x52   :  { %2669 = vmatpush3.msra.mxu0 %v3605_v21  ;;  %2701 = vmatprep.subr.mxu1 %v3428_v0 }
  0x53   :  { %2670 = vmatprep.subr.mxu0 %v3428_v0  ;;  %2702 = vmatpush3.msra.mxu1 %v3595_v19 }
  0x54   :  { %2671 = vmatpush3.msra.mxu0 %v3619_v24  ;;  %2703 = vmatprep.subr.mxu1 %v3428_v0 }
  0x55   :  { %2672 = vmatprep.subr.mxu0 %v3428_v0  ;;  %2704 = vmatpush3.msra.mxu1 %v3605_v21 }
  0x56   :  { %2673 = vmatpush3.msra.mxu0 %v3628_v26  ;;  %2705 = vmatprep.subr.mxu1 %v3428_v0 }
  0x57   :  { %2674 = vmatprep.subr.mxu0 %v3428_v0  ;;  %2706 = vmatpush3.msra.mxu1 %v3619_v24 }
  0x58   :  { %2675 = vmatpush3.msra.mxu0 %v3638_v28  ;;  %2707 = vmatprep.subr.mxu1 %v3428_v0 }
  0x59   :  { %2676 = vmatprep.subr.mxu0 %v3428_v0  ;;  %2708 = vmatpush3.msra.mxu1 %v3628_v26 }
  0x5a   :  { %2677 = vmatpush3.msra.mxu0 %v3648_v30  ;;  %2709 = vmatprep.subr.mxu1 %v3428_v0 }
  0x5b   :  { %2678 = vmatprep.subr.mxu0 %v3428_v0  ;;  %2710 = vmatpush3.msra.mxu1 %v3638_v28 }
  0x5c   :  { %2679 = vmatpush3.msra.mxu0 %v3658_v32  ;;  %2711 = vmatprep.subr.mxu1 %v3428_v0 }
  0x5d   :  { %2680 = vmatprep.subr.mxu0 %v3428_v0  ;;  %2712 = vmatpush3.msra.mxu1 %v3648_v30 }
  0x5e   :  { %2681 = vmatpush3.msra.mxu0 %v3668_v34  ;;  %2713 = vmatprep.subr.mxu1 %v3428_v0 }
  0x5f   :  { %2714 = vmatpush3.msra.mxu1 %v3658_v32  ;;  %2717 = vmatprep.mubr.msk.f32.mxu1 %vm3429_vm0, %v3428_v0 }
  0x60   :  { %2715 = vmatprep.subr.mxu1 %v3428_v0  ;;  %2720 = vmatprep.subr.mxu0 %v3428_v0 }
  0x61   :  { %2716 = vmatpush3.msra.mxu1 %v3668_v34 }
  0x62   :  { %2755 = vmatprep.subr.mxu1 %v3428_v0 }
  0xff   :  { %v2614_v37 = vpop.f32.mrf.mxu0 }
 0x100   :  { %v170_v38 = vadd.f32 %v2614_v37, %v2214_v36  ;;  %v260_v40 = vpop.f32.mrf.mxu1 }
 0x101   :  { %v164_v39 = vpop.f32.mrf.mxu0 }
 0x102   :  { %174 = vst [vmem:[#allocation2 + $0x8] sm:$0xff] %v170_v38  ;;  %v165_v41 = vadd.f32 %v2214_v36, %v164_v39  ;;  %v2649_v42 = vpop.f32.mrf.mxu1 }
 0x104   :  { %173 = vst [vmem:[#allocation2] sm:$0xff] %v165_v41 }
 0x10b   :  { %v177_v43 = vld [vmem:[#allocation2] sm:$0x3]  ;;  %v286_v1 = vld [vmem:[#allocation2 + $0x2] sm:$0x3]  ;;  %v395_v36 = vld [vmem:[#allocation2 + $0x4] sm:$0x3] }
 0x10c   :  { %v264_v44 = vadd.f32 %v260_v40, %v177_v43 }
 0x10e   :  { %v2215_v45 = vmul.f32 -1.442695, %v264_v44 }
 0x110   :  { %3262 = vpow2.f32 %v2215_v45 }
 0x11d   :  { %v3263_v46 = vpop.eup %3262 }
 0x11e   :  { %v268_v47 = vadd.f32 1.0, %v3263_v46 }
 0x120   :  { %3264 = vrcp.f32 %v268_v47 }
 0x12d   :  { %v3265_v50 = vpop.eup %3264 }
 0x12e   :  { %v271_v51 = vmul.f32 2.0, %v3265_v50 }
 0x130   :  { %v2216_v53 = vadd.f32 -1.0, %v271_v51 }
 0x132   :  { %v273_v54 = vsel %vm3749_vm3, %v2216_v53, %v3265_v50 }
 0x133   :  { %278 = vrot.lane.b32.xlu1 %v273_v54, %s3430_s5  ;;  %274 = vrot.lane.b32.xlu0 %v273_v54, %s3431_s24 }
 0x137   :  { %276 = vrot.lane.b32.xlu0 %v273_v54, %s3432_s25 }
 0x1a5   :  { %v275_v55 = vpop.permute.xlu0 %274  ;;  %v279_v62 = vpop.permute.xlu1 %278 }
 0x1a6   :  { %v280_v58 = vmul.f32 %v275_v55, %v176_v56  ;;  %v504_v56 = vld [vmem:[#allocation2 + $0x6] sm:$0x3] }
 0x1a9   :  { %v277_v57 = vpop.permute.xlu0 %276 }
 0x1aa   :  { %v281_v59 = vmul.f32 %v277_v57, %v273_v54 }
 0x1ac   :  { %v282_v60 = vadd.f32 %v281_v59, %v280_v58 }
 0x1ae   :  { %3266 = vtanh.f32 %v282_v60 }
 0x1bb   :  { %v3267_v61 = vpop.eup %3266 }
 0x1bc   :  { %v284_v63 = vmul.f32 %v3267_v61, %v279_v62 }
 0x1be   :  { %285 = vst [vmem:[#allocation3] sm:$0x3] %v284_v63  ;;  %2683 = vmatmul.mubr.f32.vlgmr.msra.gmra.mxu0 %v284_v63 }
 0x1bf   :  { %2721 = vmatpush3.msra.mxu0 %v3520_v4  ;;  %2752 = vmatprep.mubr.msk.f32.mxu0 %vm3429_vm0, %v3428_v0 }
 0x1c0   :  { %2722 = vmatprep.subr.mxu0 %v3428_v0 }
 0x1c1   :  { %2723 = vmatpush3.msra.mxu0 %v3525_v5 }
 0x1c2   :  { %2724 = vmatprep.subr.mxu0 %v3428_v0 }
 0x1c3   :  { %2725 = vmatpush3.msra.mxu0 %v3535_v7 }
 0x1c4   :  { %2726 = vmatprep.subr.mxu0 %v3428_v0 }
 0x1c5   :  { %2727 = vmatpush3.msra.mxu0 %v3545_v9 }
 0x1c6   :  { %2728 = vmatprep.subr.mxu0 %v3428_v0 }
 0x1c7   :  { %2729 = vmatpush3.msra.mxu0 %v3555_v11 }
 0x1c8   :  { %2730 = vmatprep.subr.mxu0 %v3428_v0 }
 0x1c9   :  { %2731 = vmatpush3.msra.mxu0 %v3565_v13 }
 0x1ca   :  { %2732 = vmatprep.subr.mxu0 %v3428_v0 }
 0x1cb   :  { %2733 = vmatpush3.msra.mxu0 %v3575_v15 }
 0x1cc   :  { %2734 = vmatprep.subr.mxu0 %v3428_v0 }
 0x1cd   :  { %2735 = vmatpush3.msra.mxu0 %v3585_v17 }
 0x1ce   :  { %2736 = vmatprep.subr.mxu0 %v3428_v0 }
 0x1cf   :  { %2737 = vmatpush3.msra.mxu0 %v3595_v19 }
 0x1d0   :  { %2738 = vmatprep.subr.mxu0 %v3428_v0 }
 0x1d1   :  { %2739 = vmatpush3.msra.mxu0 %v3605_v21 }
 0x1d2   :  { %2740 = vmatprep.subr.mxu0 %v3428_v0 }
 0x1d3   :  { %2741 = vmatpush3.msra.mxu0 %v3619_v24 }
 0x1d4   :  { %2742 = vmatprep.subr.mxu0 %v3428_v0 }
 0x1d5   :  { %2743 = vmatpush3.msra.mxu0 %v3628_v26 }
 0x1d6   :  { %2744 = vmatprep.subr.mxu0 %v3428_v0 }
 0x1d7   :  { %2745 = vmatpush3.msra.mxu0 %v3638_v28 }
 0x1d8   :  { %2746 = vmatprep.subr.mxu0 %v3428_v0 }
 0x1d9   :  { %2747 = vmatpush3.msra.mxu0 %v3648_v30 }
 0x1da   :  { %2748 = vmatprep.subr.mxu0 %v3428_v0 }
 0x1db   :  { %2749 = vmatpush3.msra.mxu0 %v3658_v32 }
 0x1dc   :  { %2750 = vmatprep.subr.mxu0 %v3428_v0 }
 0x1dd   :  { %2751 = vmatpush3.msra.mxu0 %v3668_v34 }
 0x1de   :  { %2790 = vmatprep.subr.mxu0 %v3428_v0 }
 0x27e   :  { %v369_v2 = vpop.f32.mrf.mxu0 }
 0x27f   :  { %v373_v3 = vadd.f32 %v369_v2, %v286_v1 }
 0x280   :  { %v2684_v6 = vpop.f32.mrf.mxu0 }
 0x281   :  { %v2217_v8 = vmul.f32 -1.442695, %v373_v3 }
 0x283   :  { %3268 = vpow2.f32 %v2217_v8 }
 0x290   :  { %v3269_v10 = vpop.eup %3268 }
 0x291   :  { %v377_v12 = vadd.f32 1.0, %v3269_v10 }
 0x293   :  { %3270 = vrcp.f32 %v377_v12 }
 0x2a0   :  { %v3271_v14 = vpop.eup %3270 }
 0x2a1   :  { %v380_v16 = vmul.f32 2.0, %v3271_v14 }
 0x2a3   :  { %v2218_v18 = vadd.f32 -1.0, %v380_v16 }
 0x2a5   :  { %v382_v20 = vsel %vm3749_vm3, %v2218_v18, %v3271_v14 }
 0x2a6   :  { %385 = vrot.lane.b32.xlu0 %v382_v20, %s3432_s25  ;;  %383 = vrot.lane.b32.xlu1 %v382_v20, %s3431_s24 }
 0x2aa   :  { %387 = vrot.lane.b32.xlu1 %v382_v20, %s3430_s5 }
 0x318   :  { %v386_v22 = vpop.permute.xlu0 %385  ;;  %v384_v23 = vpop.permute.xlu1 %383 }
 0x319   :  { %v390_v25 = vmul.f32 %v386_v22, %v382_v20  ;;  %v389_v27 = vmul.f32 %v384_v23, %v282_v60 }
 0x31b   :  { %v391_v29 = vadd.f32 %v390_v25, %v389_v27  ;;  %v722_v27 = vld [vmem:[#allocation2 + $0xa] sm:$0x3] }
 0x31c   :  { %v388_v33 = vpop.permute.xlu1 %387 }
 0x31d   :  { %3272 = vtanh.f32 %v391_v29 }
 0x32a   :  { %v3273_v31 = vpop.eup %3272 }
 0x32b   :  { %v393_v35 = vmul.f32 %v3273_v31, %v388_v33 }
 0x32d   :  { %394 = vst [vmem:[#allocation3 + $0x2] sm:$0x3] %v393_v35  ;;  %2718 = vmatmul.mubr.f32.vlgmr.msra.gmra.mxu1 %v393_v35 }
 0x32e   :  { %2756 = vmatpush3.msra.mxu1 %v3520_v4  ;;  %2787 = vmatprep.mubr.msk.f32.mxu1 %vm3429_vm0, %v3428_v0 }
 0x32f   :  { %2757 = vmatprep.subr.mxu1 %v3428_v0 }
 0x330   :  { %2758 = vmatpush3.msra.mxu1 %v3525_v5 }
 0x331   :  { %2759 = vmatprep.subr.mxu1 %v3428_v0 }
 0x332   :  { %2760 = vmatpush3.msra.mxu1 %v3535_v7 }
 0x333   :  { %2761 = vmatprep.subr.mxu1 %v3428_v0 }
 0x334   :  { %2762 = vmatpush3.msra.mxu1 %v3545_v9 }
 0x335   :  { %2763 = vmatprep.subr.mxu1 %v3428_v0 }
 0x336   :  { %2764 = vmatpush3.msra.mxu1 %v3555_v11 }
 0x337   :  { %2765 = vmatprep.subr.mxu1 %v3428_v0 }
 0x338   :  { %2766 = vmatpush3.msra.mxu1 %v3565_v13 }
 0x339   :  { %2767 = vmatprep.subr.mxu1 %v3428_v0 }
 0x33a   :  { %2768 = vmatpush3.msra.mxu1 %v3575_v15 }
 0x33b   :  { %2769 = vmatprep.subr.mxu1 %v3428_v0 }
 0x33c   :  { %2770 = vmatpush3.msra.mxu1 %v3585_v17 }
 0x33d   :  { %2771 = vmatprep.subr.mxu1 %v3428_v0 }
 0x33e   :  { %2772 = vmatpush3.msra.mxu1 %v3595_v19 }
 0x33f   :  { %2773 = vmatprep.subr.mxu1 %v3428_v0 }
 0x340   :  { %2774 = vmatpush3.msra.mxu1 %v3605_v21 }
 0x341   :  { %2775 = vmatprep.subr.mxu1 %v3428_v0 }
 0x342   :  { %2776 = vmatpush3.msra.mxu1 %v3619_v24 }
 0x343   :  { %2777 = vmatprep.subr.mxu1 %v3428_v0 }
 0x344   :  { %2778 = vmatpush3.msra.mxu1 %v3628_v26 }
 0x345   :  { %2779 = vmatprep.subr.mxu1 %v3428_v0 }
 0x346   :  { %2780 = vmatpush3.msra.mxu1 %v3638_v28 }
 0x347   :  { %2781 = vmatprep.subr.mxu1 %v3428_v0 }
 0x348   :  { %2782 = vmatpush3.msra.mxu1 %v3648_v30 }
 0x349   :  { %2783 = vmatprep.subr.mxu1 %v3428_v0 }
 0x34a   :  { %2784 = vmatpush3.msra.mxu1 %v3658_v32 }
 0x34b   :  { %2785 = vmatprep.subr.mxu1 %v3428_v0 }
 0x34c   :  { %2786 = vmatpush3.msra.mxu1 %v3668_v34 }
 0x34d   :  { %2825 = vmatprep.subr.mxu1 %v3428_v0 }
 0x3ed   :  { %v478_v37 = vpop.f32.mrf.mxu1 }
 0x3ee   :  { %v482_v38 = vadd.f32 %v478_v37, %v395_v36 }
 0x3ef   :  { %v2719_v39 = vpop.f32.mrf.mxu1 }
 0x3f0   :  { %v2219_v40 = vmul.f32 -1.442695, %v482_v38 }
 0x3f2   :  { %3274 = vpow2.f32 %v2219_v40 }
 0x3ff   :  { %v3275_v41 = vpop.eup %3274 }
 0x400   :  { %v486_v42 = vadd.f32 1.0, %v3275_v41 }
 0x402   :  { %3276 = vrcp.f32 %v486_v42 }
 0x40f   :  { %v3277_v43 = vpop.eup %3276 }
 0x410   :  { %v489_v44 = vmul.f32 2.0, %v3277_v43 }
 0x412   :  { %v2220_v45 = vadd.f32 -1.0, %v489_v44 }
 0x414   :  { %v491_v46 = vsel %vm3749_vm3, %v2220_v45, %v3277_v43 }
 0x415   :  { %494 = vrot.lane.b32.xlu1 %v491_v46, %s3432_s25  ;;  %492 = vrot.lane.b32.xlu0 %v491_v46, %s3431_s24 }
 0x419   :  { %496 = vrot.lane.b32.xlu0 %v491_v46, %s3430_s5 }
 0x487   :  { %v495_v47 = vpop.permute.xlu1 %494  ;;  %v493_v48 = vpop.permute.xlu0 %492 }
 0x488   :  { %v499_v49 = vmul.f32 %v495_v47, %v491_v46  ;;  %v498_v50 = vmul.f32 %v493_v48, %v391_v29 }
 0x48a   :  { %v500_v51 = vadd.f32 %v499_v49, %v498_v50 }
 0x48b   :  { %v497_v54 = vpop.permute.xlu0 %496 }
 0x48c   :  { %3278 = vtanh.f32 %v500_v51 }
 0x499   :  { %v3279_v53 = vpop.eup %3278 }
 0x49a   :  { %v502_v55 = vmul.f32 %v3279_v53, %v497_v54  ;;  %v955_v53 = vld [vmem:[%s4465_s4 + $0x70] sm:$0xff]  ;;  %v954_v54 = vld [vmem:[%s4465_s4 + $0x68] sm:$0xff] }
 0x49c   :  { %503 = vst [vmem:[#allocation3 + $0x4] sm:$0x3] %v502_v55  ;;  %2753 = vmatmul.mubr.f32.vlgmr.msra.gmra.mxu0 %v502_v55  ;;  %v953_v55 = vld [vmem:[%s4465_s4 + $0x60] sm:$0xff] }
 0x49d   :  { %2791 = vmatpush3.msra.mxu0 %v3520_v4  ;;  %2822 = vmatprep.mubr.msk.f32.mxu0 %vm3429_vm0, %v3428_v0 }
 0x49e   :  { %2792 = vmatprep.subr.mxu0 %v3428_v0 }
 0x49f   :  { %2793 = vmatpush3.msra.mxu0 %v3525_v5 }
 0x4a0   :  { %2794 = vmatprep.subr.mxu0 %v3428_v0 }
 0x4a1   :  { %2795 = vmatpush3.msra.mxu0 %v3535_v7 }
 0x4a2   :  { %2796 = vmatprep.subr.mxu0 %v3428_v0 }
 0x4a3   :  { %2797 = vmatpush3.msra.mxu0 %v3545_v9 }
 0x4a4   :  { %2798 = vmatprep.subr.mxu0 %v3428_v0 }
 0x4a5   :  { %2799 = vmatpush3.msra.mxu0 %v3555_v11 }
 0x4a6   :  { %2800 = vmatprep.subr.mxu0 %v3428_v0 }
 0x4a7   :  { %2801 = vmatpush3.msra.mxu0 %v3565_v13 }
 0x4a8   :  { %2802 = vmatprep.subr.mxu0 %v3428_v0 }
 0x4a9   :  { %2803 = vmatpush3.msra.mxu0 %v3575_v15 }
 0x4aa   :  { %2804 = vmatprep.subr.mxu0 %v3428_v0 }
 0x4ab   :  { %2805 = vmatpush3.msra.mxu0 %v3585_v17 }
 0x4ac   :  { %2806 = vmatprep.subr.mxu0 %v3428_v0 }
 0x4ad   :  { %2807 = vmatpush3.msra.mxu0 %v3595_v19 }
 0x4ae   :  { %2808 = vmatprep.subr.mxu0 %v3428_v0 }
 0x4af   :  { %2809 = vmatpush3.msra.mxu0 %v3605_v21 }
 0x4b0   :  { %2810 = vmatprep.subr.mxu0 %v3428_v0 }
 0x4b1   :  { %2811 = vmatpush3.msra.mxu0 %v3619_v24 }
 0x4b2   :  { %2812 = vmatprep.subr.mxu0 %v3428_v0 }
 0x4b3   :  { %2813 = vmatpush3.msra.mxu0 %v3628_v26 }
 0x4b4   :  { %2814 = vmatprep.subr.mxu0 %v3428_v0 }
 0x4b5   :  { %2815 = vmatpush3.msra.mxu0 %v3638_v28 }
 0x4b6   :  { %2816 = vmatprep.subr.mxu0 %v3428_v0 }
 0x4b7   :  { %2817 = vmatpush3.msra.mxu0 %v3648_v30 }
 0x4b8   :  { %2818 = vmatprep.subr.mxu0 %v3428_v0 }
 0x4b9   :  { %2819 = vmatpush3.msra.mxu0 %v3658_v32 }
 0x4ba   :  { %2820 = vmatprep.subr.mxu0 %v3428_v0 }
 0x4bb   :  { %2821 = vmatpush3.msra.mxu0 %v3668_v34 }
 0x4bc   :  { %2860 = vmatprep.subr.mxu0 %v3428_v0 }
 0x55c   :  { %v587_v57 = vpop.f32.mrf.mxu0 }
 0x55d   :  { %v591_v58 = vadd.f32 %v587_v57, %v504_v56  ;;  %v952_v56 = vld [vmem:[%s4465_s4 + $0x58] sm:$0xff]  ;;  %v951_v57 = vld [vmem:[%s4465_s4 + $0x50] sm:$0xff] }
 0x55e   :  { %v2754_v59 = vpop.f32.mrf.mxu0 }
 0x55f   :  { %v2221_v60 = vmul.f32 -1.442695, %v591_v58  ;;  %v831_v58 = vld [vmem:[#allocation2 + $0xc] sm:$0x3] }
 0x561   :  { %3280 = vpow2.f32 %v2221_v60 }
 0x56e   :  { %v3281_v61 = vpop.eup %3280 }
 0x56f   :  { %v595_v62 = vadd.f32 1.0, %v3281_v61 }
 0x571   :  { %3282 = vrcp.f32 %v595_v62 }
 0x57e   :  { %v3283_v63 = vpop.eup %3282 }
 0x57f   :  { %v598_v1 = vmul.f32 2.0, %v3283_v63 }
 0x581   :  { %v2222_v2 = vadd.f32 -1.0, %v598_v1 }
 0x583   :  { %v600_v3 = vsel %vm3749_vm3, %v2222_v2, %v3283_v63  ;;  %v950_v2 = vld [vmem:[%s4465_s4 + $0x48] sm:$0xff] }
 0x584   :  { %603 = vrot.lane.b32.xlu0 %v600_v3, %s3432_s25  ;;  %601 = vrot.lane.b32.xlu1 %v600_v3, %s3431_s24 }
 0x588   :  { %605 = vrot.lane.b32.xlu1 %v600_v3, %s3430_s5 }
 0x5f6   :  { %v604_v6 = vpop.permute.xlu0 %603  ;;  %v602_v8 = vpop.permute.xlu1 %601 }
 0x5f7   :  { %v608_v10 = vmul.f32 %v604_v6, %v600_v3  ;;  %v607_v12 = vmul.f32 %v602_v8, %v500_v51  ;;  %v956_v51 = vld [vmem:[%s4465_s4 + $0x78] sm:$0xff]  ;;  %v949_v3 = vld [vmem:[%s4465_s4 + $0x40] sm:$0xff] }
 0x5f8   :  { %v948_v6 = vld [vmem:[%s4465_s4 + $0x38] sm:$0xff] }
 0x5f9   :  { %v609_v14 = vadd.f32 %v608_v10, %v607_v12  ;;  %v947_v10 = vld [vmem:[%s4465_s4 + $0x30] sm:$0xff] }
 0x5fa   :  { %v606_v18 = vpop.permute.xlu1 %605 }
 0x5fb   :  { %3284 = vtanh.f32 %v609_v14 }
 0x608   :  { %v3285_v16 = vpop.eup %3284 }
 0x609   :  { %v611_v20 = vmul.f32 %v3285_v16, %v606_v18  ;;  %v945_v18 = vld [vmem:[%s4465_s4 + $0x20] sm:$0xff] }
 0x60b   :  { %612 = vst [vmem:[#allocation3 + $0x6] sm:$0x3] %v611_v20  ;;  %2788 = vmatmul.mubr.f32.vlgmr.msra.gmra.mxu1 %v611_v20 }
 0x60c   :  { %2826 = vmatpush3.msra.mxu1 %v3520_v4  ;;  %2857 = vmatprep.mubr.msk.f32.mxu1 %vm3429_vm0, %v3428_v0  ;;  %v613_v4 = vld [vmem:[#allocation2 + $0x8] sm:$0x3] }
 0x60d   :  { %2827 = vmatprep.subr.mxu1 %v3428_v0 }
 0x60e   :  { %2828 = vmatpush3.msra.mxu1 %v3525_v5 }
 0x60f   :  { %2829 = vmatprep.subr.mxu1 %v3428_v0 }
 0x610   :  { %2830 = vmatpush3.msra.mxu1 %v3535_v7 }
 0x611   :  { %2831 = vmatprep.subr.mxu1 %v3428_v0 }
 0x612   :  { %2832 = vmatpush3.msra.mxu1 %v3545_v9  ;;  %v1049_v50 = vld [vmem:[#allocation3] sm:$0xff] }
 0x613   :  { %2833 = vmatprep.subr.mxu1 %v3428_v0 }
 0x614   :  { %2834 = vmatpush3.msra.mxu1 %v3555_v11 }
 0x615   :  { %2835 = vmatprep.subr.mxu1 %v3428_v0 }
 0x616   :  { %2836 = vmatpush3.msra.mxu1 %v3565_v13 }
 0x617   :  { %2837 = vmatprep.subr.mxu1 %v3428_v0 }
 0x618   :  { %2838 = vmatpush3.msra.mxu1 %v3575_v15 }
 0x619   :  { %2839 = vmatprep.subr.mxu1 %v3428_v0 }
 0x61a   :  { %2840 = vmatpush3.msra.mxu1 %v3585_v17 }
 0x61b   :  { %2841 = vmatprep.subr.mxu1 %v3428_v0 }
 0x61c   :  { %2842 = vmatpush3.msra.mxu1 %v3595_v19 }
 0x61d   :  { %2843 = vmatprep.subr.mxu1 %v3428_v0 }
 0x61e   :  { %2844 = vmatpush3.msra.mxu1 %v3605_v21 }
 0x61f   :  { %2845 = vmatprep.subr.mxu1 %v3428_v0 }
 0x620   :  { %2846 = vmatpush3.msra.mxu1 %v3619_v24 }
 0x621   :  { %2847 = vmatprep.subr.mxu1 %v3428_v0 }
 0x622   :  { %2848 = vmatpush3.msra.mxu1 %v3628_v26 }
 0x623   :  { %2849 = vmatprep.subr.mxu1 %v3428_v0 }
 0x624   :  { %2850 = vmatpush3.msra.mxu1 %v3638_v28 }
 0x625   :  { %2851 = vmatprep.subr.mxu1 %v3428_v0 }
 0x626   :  { %2852 = vmatpush3.msra.mxu1 %v3648_v30 }
 0x627   :  { %2853 = vmatprep.subr.mxu1 %v3428_v0 }
 0x628   :  { %2854 = vmatpush3.msra.mxu1 %v3658_v32 }
 0x629   :  { %2855 = vmatprep.subr.mxu1 %v3428_v0 }
 0x62a   :  { %2856 = vmatpush3.msra.mxu1 %v3668_v34 }
 0x6cb   :  { %v696_v5 = vpop.f32.mrf.mxu1 }
 0x6cc   :  { %v700_v7 = vadd.f32 %v696_v5, %v613_v4  ;;  %v944_v4 = vld [vmem:[%s4465_s4 + $0x18] sm:$0xff]  ;;  %v943_v5 = vld [vmem:[%s4465_s4 + $0x10] sm:$0xff] }
 0x6cd   :  { %v2789_v9 = vpop.f32.mrf.mxu1 }
 0x6ce   :  { %v2223_v11 = vmul.f32 -1.442695, %v700_v7  ;;  %v942_v7 = vld [vmem:[%s4465_s4 + $0x8] sm:$0xff]  ;;  %v941_v9 = vld [vmem:[%s4465_s4] sm:$0xff] }
 0x6d0   :  { %3286 = vpow2.f32 %v2223_v11 }
 0x6dd   :  { %v3287_v13 = vpop.eup %3286 }
 0x6de   :  { %v704_v15 = vadd.f32 1.0, %v3287_v13 }
 0x6e0   :  { %3288 = vrcp.f32 %v704_v15 }
 0x6ed   :  { %v3289_v17 = vpop.eup %3288 }
 0x6ee   :  { %v707_v19 = vmul.f32 2.0, %v3289_v17 }
 0x6f0   :  { %v2224_v21 = vadd.f32 -1.0, %v707_v19 }
 0x6f2   :  { %v709_v24 = vsel %vm3749_vm3, %v2224_v21, %v3289_v17 }
 0x6f3   :  { %712 = vrot.lane.b32.xlu1 %v709_v24, %s3432_s25  ;;  %710 = vrot.lane.b32.xlu0 %v709_v24, %s3431_s24 }
 0x6f7   :  { %714 = vrot.lane.b32.xlu0 %v709_v24, %s3430_s5 }
 0x765   :  { %v713_v26 = vpop.permute.xlu1 %712  ;;  %v711_v28 = vpop.permute.xlu0 %710 }
 0x766   :  { %v717_v30 = vmul.f32 %v713_v26, %v709_v24  ;;  %v716_v32 = vmul.f32 %v711_v28, %v609_v14  ;;  %v946_v14 = vld [vmem:[%s4465_s4 + $0x28] sm:$0xff]  ;;  %v1066_v28 = vld [vmem:[%s4467_s6 + $0x78] sm:$0xff]  ;;  %s2204_s4 = sshll.u32 %s3433_s19, 4  ;;  %s2205_s4 = int_to_ptr.vmem [resolvable:$true] %s2204_s4 }
 0x767   :  { %2895 = vmatprep.subr.mxu1 %v1066_v28  ;;  %s3398_s3 = scalar_lea.vmem %s2205_s4, 128  ;;  %p3403_p11 = scmp.lt.s32.totalorder %s2205_s4, %s2205_s4 }
 0x768   :  { %v718_v34 = vadd.f32 %v717_v30, %v716_v32  ;;  %v1065_v30 = vld [vmem:[%s4467_s6 + $0x70] sm:$0xff]  ;;  %v940_v32 = vld [vmem:[#allocation2 + $0xe] sm:$0x3]  ;;  %p3399_p10 = scmp.ne.s32.totalorder %s2205_s4, %s3398_s3  ;;  %p3404_p12 = scmp.lt.s32.totalorder %s3398_s3, %s3398_s3 }
 0x769   :  { %v715_v23 = vpop.permute.xlu0 %714 }
 0x76a   :  { %3290 = vtanh.f32 %v718_v34  ;;  %p3405_p13 = por %p3404_p12, %p3403_p11 }
 0x76c   :  { %p3406_p0 = pnand %p3405_p13, %p3399_p10 }
 0x777   :  { %v3291_v22 = vpop.eup %3290 }
 0x778   :  { %v720_v25 = vmul.f32 %v3291_v22, %v715_v23 }
 0x77a   :  { %721 = vst [vmem:[#allocation3 + $0x8] sm:$0x3] %v720_v25  ;;  %2823 = vmatmul.mubr.f32.vlgmr.msra.gmra.mxu0 %v720_v25 }
 0x77b   :  { %2892 = vmatprep.mubr.msk.f32.mxu0 %vm3429_vm0, %v3428_v0  ;;  %2861 = vmatpush3.msra.mxu0 %v956_v51  ;;  %v4062_v51 = vld [vmem:[#allocation4 + $0x50] sm:$0xff] }
 0x77c   :  { %2862 = vmatprep.subr.mxu0 %v3428_v0 }
 0x77d   :  { %2863 = vmatpush3.msra.mxu0 %v955_v53  ;;  %v1055_v53 = vld [vmem:[%s4467_s6 + $0x20] sm:$0xff] }
 0x77e   :  { %2864 = vmatprep.subr.mxu0 %v3428_v0 }
 0x77f   :  { %2865 = vmatpush3.msra.mxu0 %v954_v54  ;;  %v4069_v54 = vld [vmem:[#allocation4 + $0x48] sm:$0xff] }
 0x780   :  { %2866 = vmatprep.subr.mxu0 %v3428_v0 }
 0x781   :  { %2867 = vmatpush3.msra.mxu0 %v953_v55  ;;  %v1054_v55 = vld [vmem:[%s4467_s6 + $0x18] sm:$0xff] }
 0x782   :  { %2868 = vmatprep.subr.mxu0 %v3428_v0 }
 0x783   :  { %2869 = vmatpush3.msra.mxu0 %v952_v56  ;;  %v4076_v56 = vld [vmem:[#allocation4 + $0x40] sm:$0xff] }
 0x784   :  { %2870 = vmatprep.subr.mxu0 %v3428_v0 }
 0x785   :  { %2871 = vmatpush3.msra.mxu0 %v951_v57  ;;  %v1053_v57 = vld [vmem:[%s4467_s6 + $0x10] sm:$0xff] }
 0x786   :  { %2872 = vmatprep.subr.mxu0 %v3428_v0 }
 0x787   :  { %2873 = vmatpush3.msra.mxu0 %v950_v2  ;;  %v4110_v2 = vld [vmem:[#allocation4 + $0x10] sm:$0xff] }
 0x788   :  { %2874 = vmatprep.subr.mxu0 %v3428_v0 }
 0x789   :  { %2875 = vmatpush3.msra.mxu0 %v949_v3  ;;  %v4114_v3 = vld [vmem:[#allocation4 + $0x8] sm:$0xff] }
 0x78a   :  { %2876 = vmatprep.subr.mxu0 %v3428_v0 }
 0x78b   :  { %2877 = vmatpush3.msra.mxu0 %v948_v6  ;;  %v4118_v6 = vld [vmem:[#allocation4] sm:$0xff] }
 0x78c   :  { %2878 = vmatprep.subr.mxu0 %v3428_v0 }
 0x78d   :  { %2879 = vmatpush3.msra.mxu0 %v947_v10 }
 0x78e   :  { %2880 = vmatprep.subr.mxu0 %v3428_v0 }
 0x78f   :  { %2881 = vmatpush3.msra.mxu0 %v946_v14 }
 0x790   :  { %2882 = vmatprep.subr.mxu0 %v3428_v0 }
 0x791   :  { %2883 = vmatpush3.msra.mxu0 %v945_v18 }
 0x792   :  { %2884 = vmatprep.subr.mxu0 %v3428_v0 }
 0x793   :  { %2885 = vmatpush3.msra.mxu0 %v944_v4 }
 0x794   :  { %2886 = vmatprep.subr.mxu0 %v3428_v0 }
 0x795   :  { %2887 = vmatpush3.msra.mxu0 %v943_v5 }
 0x796   :  { %2888 = vmatprep.subr.mxu0 %v3428_v0 }
 0x797   :  { %2889 = vmatpush3.msra.mxu0 %v942_v7 }
 0x798   :  { %2890 = vmatprep.subr.mxu0 %v3428_v0 }
 0x799   :  { %2891 = vmatpush3.msra.mxu0 %v941_v9 }
 0x79a   :  { %2930 = vmatprep.subr.mxu0 %v3428_v0 }
 0x83a   :  { %v805_v29 = vpop.f32.mrf.mxu0 }
 0x83b   :  { %v809_v31 = vadd.f32 %v805_v29, %v722_v27 }
 0x83c   :  { %v2824_v33 = vpop.f32.mrf.mxu0 }
 0x83d   :  { %v2225_v35 = vmul.f32 -1.442695, %v809_v31  ;;  %v1064_v31 = vld [vmem:[%s4467_s6 + $0x68] sm:$0xff]  ;;  %v1063_v33 = vld [vmem:[%s4467_s6 + $0x60] sm:$0xff] }
 0x83f   :  { %3292 = vpow2.f32 %v2225_v35  ;;  %v1062_v35 = vld [vmem:[%s4467_s6 + $0x58] sm:$0xff] }
 0x84c   :  { %v3293_v36 = vpop.eup %3292 }
 0x84d   :  { %v813_v37 = vadd.f32 1.0, %v3293_v36  ;;  %v1061_v36 = vld [vmem:[%s4467_s6 + $0x50] sm:$0xff] }
 0x84f   :  { %3294 = vrcp.f32 %v813_v37 }
 0x85c   :  { %v3295_v38 = vpop.eup %3294 }
 0x85d   :  { %v816_v39 = vmul.f32 2.0, %v3295_v38 }
 0x85f   :  { %v2226_v40 = vadd.f32 -1.0, %v816_v39 }
 0x861   :  { %v818_v41 = vsel %vm3749_vm3, %v2226_v40, %v3295_v38  ;;  %v4019_v38 = vld [vmem:[#allocation4 + $0x78] sm:$0xff]  ;;  %v1060_v40 = vld [vmem:[%s4467_s6 + $0x48] sm:$0xff] }
 0x862   :  { %821 = vrot.lane.b32.xlu0 %v818_v41, %s3432_s25  ;;  %819 = vrot.lane.b32.xlu1 %v818_v41, %s3431_s24 }
 0x866   :  { %823 = vrot.lane.b32.xlu1 %v818_v41, %s3430_s5 }
 0x8d4   :  { %v822_v42 = vpop.permute.xlu0 %821  ;;  %v820_v43 = vpop.permute.xlu1 %819 }
 0x8d5   :  { %v826_v44 = vmul.f32 %v822_v42, %v818_v41  ;;  %v825_v45 = vmul.f32 %v820_v43, %v718_v34  ;;  %v4026_v41 = vld [vmem:[#allocation4 + $0x70] sm:$0xff]  ;;  %v1059_v43 = vld [vmem:[%s4467_s6 + $0x40] sm:$0xff] }
 0x8d7   :  { %v3923_v46 = vadd.f32 %v826_v44, %v825_v45  ;;  %v4033_v44 = vld [vmem:[#allocation4 + $0x68] sm:$0xff] }
 0x8d8   :  { %v824_v48 = vpop.permute.xlu1 %823 }
 0x8d9   :  { %3296 = vtanh.f32 %v3923_v46 }
 0x8e6   :  { %v3297_v47 = vpop.eup %3296 }
 0x8e7   :  { %v829_v49 = vmul.f32 %v3297_v47, %v824_v48  ;;  %v4047_v47 = vld [vmem:[#allocation4 + $0x60] sm:$0xff]  ;;  %v1057_v48 = vld [vmem:[%s4467_s6 + $0x30] sm:$0xff] }
 0x8e9   :  { %830 = vst [vmem:[#allocation3 + $0xa] sm:$0x3] %v829_v49  ;;  %2858 = vmatmul.mubr.f32.vlgmr.msra.gmra.mxu1 %v829_v49  ;;  %v4054_v49 = vld [vmem:[#allocation4 + $0x58] sm:$0xff] }
 0x8ea   :  { %2927 = vmatprep.mubr.f32.mxu1 %v1049_v50  ;;  %2896 = vmatpush3.msra.mxu1 %v1066_v28  ;;  %v1056_v50 = vld [vmem:[%s4467_s6 + $0x28] sm:$0xff] }
 0x8eb   :  { %2897 = vmatprep.subr.mxu1 %v1065_v30 }
 0x8ec   :  { %2898 = vmatpush3.msra.mxu1 %v1065_v30 }
 0x8ed   :  { %2899 = vmatprep.subr.mxu1 %v1064_v31 }
 0x8ee   :  { %2900 = vmatpush3.msra.mxu1 %v1064_v31 }
 0x8ef   :  { %2901 = vmatprep.subr.mxu1 %v1063_v33 }
 0x8f0   :  { %2902 = vmatpush3.msra.mxu1 %v1063_v33 }
 0x8f1   :  { %2903 = vmatprep.subr.mxu1 %v1062_v35 }
 0x8f2   :  { %2904 = vmatpush3.msra.mxu1 %v1062_v35 }
 0x8f3   :  { %2905 = vmatprep.subr.mxu1 %v1061_v36 }
 0x8f4   :  { %2906 = vmatpush3.msra.mxu1 %v1061_v36 }
 0x8f5   :  { %2907 = vmatprep.subr.mxu1 %v1060_v40 }
 0x8f6   :  { %2908 = vmatpush3.msra.mxu1 %v1060_v40 }
 0x8f7   :  { %2909 = vmatprep.subr.mxu1 %v1059_v43 }
 0x8f8   :  { %2910 = vmatpush3.msra.mxu1 %v1059_v43 }
 0x9a9   :  { %v914_v59 = vpop.f32.mrf.mxu1 }
 0x9aa   :  { %v918_v60 = vadd.f32 %v914_v59, %v831_v58  ;;  %v4083_v58 = vld [vmem:[#allocation4 + $0x38] sm:$0xff]  ;;  %v1052_v59 = vld [vmem:[%s4467_s6 + $0x8] sm:$0xff] }
 0x9ab   :  { %v2859_v61 = vpop.f32.mrf.mxu1 }
 0x9ac   :  { %v2227_v62 = vmul.f32 -1.442695, %v918_v60  ;;  %v4090_v60 = vld [vmem:[#allocation4 + $0x30] sm:$0xff]  ;;  %v1051_v61 = vld [vmem:[%s4467_s6] sm:$0xff] }
 0x9ae   :  { %3298 = vpow2.f32 %v2227_v62  ;;  %v4097_v62 = vld [vmem:[#allocation4 + $0x28] sm:$0xff] }
 0x9bb   :  { %v3299_v63 = vpop.eup %3298 }
 0x9bc   :  { %v922_v1 = vadd.f32 1.0, %v3299_v63  ;;  %v4101_v63 = vld [vmem:[#allocation4 + $0x20] sm:$0xff] }
 0x9be   :  { %3300 = vrcp.f32 %v922_v1  ;;  %v4106_v1 = vld [vmem:[#allocation4 + $0x18] sm:$0xff] }
 0x9cb   :  { %v3301_v8 = vpop.eup %3300 }
 0x9cc   :  { %v925_v12 = vmul.f32 2.0, %v3301_v8 }
 0x9ce   :  { %v2228_v16 = vadd.f32 -1.0, %v925_v12 }
 0x9d0   :  { %v927_v20 = vsel %vm3749_vm3, %v2228_v16, %v3301_v8  ;;  %v2232_v8 = vld [vmem:[%s4462_s1 + $0x2] sm:$0x3] }
 0x9d1   :  { %930 = vrot.lane.b32.xlu1 %v927_v20, %s3432_s25  ;;  %928 = vrot.lane.b32.xlu0 %v927_v20, %s3431_s24 }
 0x9d5   :  { %932 = vrot.lane.b32.xlu0 %v927_v20, %s3430_s5 }
 0xa43   :  { %v931_v11 = vpop.permute.xlu1 %930  ;;  %v929_v13 = vpop.permute.xlu0 %928 }
 0xa44   :  { %v935_v15 = vmul.f32 %v931_v11, %v927_v20  ;;  %v934_v17 = vmul.f32 %v929_v13, %v3923_v46  ;;  %v1058_v46 = vld [vmem:[%s4467_s6 + $0x38] sm:$0xff]  ;;  %v2231_v13 = vld [vmem:[#allocation7] ss:$0 sm:$0xff] }
 0xa45   :  { %2911 = vmatprep.subr.mxu1 %v1058_v46 }
 0xa46   :  { %v3996_v19 = vadd.f32 %v935_v15, %v934_v17  ;;  %2912 = vmatpush3.msra.mxu1 %v1058_v46 }
 0xa47   :  { %v933_v24 = vpop.permute.xlu0 %932  ;;  %2913 = vmatprep.subr.mxu1 %v1057_v48 }
 0xa48   :  { %3302 = vtanh.f32 %v3996_v19  ;;  %2914 = vmatpush3.msra.mxu1 %v1057_v48 }
 0xa49   :  { %2915 = vmatprep.subr.mxu1 %v1056_v50 }
 0xa4a   :  { %2916 = vmatpush3.msra.mxu1 %v1056_v50 }
 0xa4b   :  { %2917 = vmatprep.subr.mxu1 %v1055_v53 }
 0xa4c   :  { %2918 = vmatpush3.msra.mxu1 %v1055_v53 }
 0xa4d   :  { %2919 = vmatprep.subr.mxu1 %v1054_v55 }
 0xa4e   :  { %2920 = vmatpush3.msra.mxu1 %v1054_v55 }
 0xa4f   :  { %2921 = vmatprep.subr.mxu1 %v1053_v57 }
 0xa50   :  { %2922 = vmatpush3.msra.mxu1 %v1053_v57 }
 0xa51   :  { %2923 = vmatprep.subr.mxu1 %v1052_v59 }
 0xa52   :  { %2924 = vmatpush3.msra.mxu1 %v1052_v59 }
 0xa53   :  { %2925 = vmatprep.subr.mxu1 %v1051_v61 }
 0xa54   :  { %2926 = vmatpush3.msra.mxu1 %v1051_v61 }
 0xa55   :  { %v3303_v21 = vpop.eup %3302  ;;  %2965 = vmatprep.subr.mxu1 %v3428_v0 }
 0xa56   :  { %v938_v26 = vmul.f32 %v3303_v21, %v933_v24 }
 0xa58   :  { %939 = vst [vmem:[#allocation3 + $0xc] sm:$0x3] %v938_v26  ;;  %2893 = vmatmul.mubr.f32.vlgmr.msra.gmra.mxu0 %v938_v26 }
 0xa59   :  { %2962 = vmatprep.mubr.msk.f32.mxu0 %vm3429_vm0, %v3428_v0  ;;  %2931 = vmatpush3.msra.mxu0 %v4019_v38 }
 0xa5a   :  { %2932 = vmatprep.subr.mxu0 %v3428_v0 }
 0xa5b   :  { %2933 = vmatpush3.msra.mxu0 %v4026_v41 }
 0xa5c   :  { %2934 = vmatprep.subr.mxu0 %v3428_v0 }
 0xa5d   :  { %2935 = vmatpush3.msra.mxu0 %v4033_v44 }
 0xa5e   :  { %2936 = vmatprep.subr.mxu0 %v3428_v0 }
 0xa5f   :  { %2937 = vmatpush3.msra.mxu0 %v4047_v47 }
 0xa60   :  { %2938 = vmatprep.subr.mxu0 %v3428_v0 }
 0xa61   :  { %2939 = vmatpush3.msra.mxu0 %v4054_v49 }
 0xa62   :  { %2940 = vmatprep.subr.mxu0 %v3428_v0 }
 0xa63   :  { %2941 = vmatpush3.msra.mxu0 %v4062_v51 }
 0xa64   :  { %2942 = vmatprep.subr.mxu0 %v3428_v0 }
 0xa65   :  { %2943 = vmatpush3.msra.mxu0 %v4069_v54 }
 0xa66   :  { %2944 = vmatprep.subr.mxu0 %v3428_v0 }
 0xa67   :  { %2945 = vmatpush3.msra.mxu0 %v4076_v56 }
 0xa68   :  { %2946 = vmatprep.subr.mxu0 %v3428_v0 }
 0xa69   :  { %2947 = vmatpush3.msra.mxu0 %v4083_v58 }
 0xa6a   :  { %2948 = vmatprep.subr.mxu0 %v3428_v0 }
 0xa6b   :  { %2949 = vmatpush3.msra.mxu0 %v4090_v60 }
 0xa6c   :  { %2950 = vmatprep.subr.mxu0 %v3428_v0 }
 0xa6d   :  { %2951 = vmatpush3.msra.mxu0 %v4097_v62 }
 0xa6e   :  { %2952 = vmatprep.subr.mxu0 %v3428_v0 }
 0xa6f   :  { %2953 = vmatpush3.msra.mxu0 %v4101_v63 }
 0xa70   :  { %2954 = vmatprep.subr.mxu0 %v3428_v0 }
 0xa71   :  { %2955 = vmatpush3.msra.mxu0 %v4106_v1 }
 0xa72   :  { %2956 = vmatprep.subr.mxu0 %v3428_v0 }
 0xa73   :  { %2957 = vmatpush3.msra.mxu0 %v4110_v2 }
 0xa74   :  { %2958 = vmatprep.subr.mxu0 %v3428_v0 }
 0xa75   :  { %2959 = vmatpush3.msra.mxu0 %v4114_v3 }
 0xa76   :  { %2960 = vmatprep.subr.mxu0 %v3428_v0 }
 0xa77   :  { %2961 = vmatpush3.msra.mxu0 %v4118_v6 }
 0xa78   :  { %2963 = vmatmul.mubr.f32.vlgmr.msra.gmra.mxu0 %v2232_v8  ;;  %3000 = vmatprep.subr.mxu0 %v3428_v0 }
 0xa79   :  { %3001 = vmatpush3.msra.mxu0 %v4019_v38  ;;  %3032 = vmatprep.mubr.msk.f32.mxu0 %vm3429_vm0, %v3428_v0 }
 0xa7a   :  { %3002 = vmatprep.subr.mxu0 %v3428_v0 }
 0xa7b   :  { %3003 = vmatpush3.msra.mxu0 %v4026_v41 }
 0xa7c   :  { %3004 = vmatprep.subr.mxu0 %v3428_v0 }
 0xa7d   :  { %3005 = vmatpush3.msra.mxu0 %v4033_v44 }
 0xa7e   :  { %3006 = vmatprep.subr.mxu0 %v3428_v0 }
 0xa7f   :  { %3007 = vmatpush3.msra.mxu0 %v4047_v47 }
 0xa80   :  { %3008 = vmatprep.subr.mxu0 %v3428_v0 }
 0xa81   :  { %3009 = vmatpush3.msra.mxu0 %v4054_v49 }
 0xa82   :  { %3010 = vmatprep.subr.mxu0 %v3428_v0 }
 0xa83   :  { %3011 = vmatpush3.msra.mxu0 %v4062_v51 }
 0xa84   :  { %3012 = vmatprep.subr.mxu0 %v3428_v0 }
 0xa85   :  { %3013 = vmatpush3.msra.mxu0 %v4069_v54 }
 0xa86   :  { %3014 = vmatprep.subr.mxu0 %v3428_v0 }
 0xa87   :  { %3015 = vmatpush3.msra.mxu0 %v4076_v56 }
 0xa88   :  { %3016 = vmatprep.subr.mxu0 %v3428_v0 }
 0xa89   :  { %3017 = vmatpush3.msra.mxu0 %v4083_v58 }
 0xa8a   :  { %3018 = vmatprep.subr.mxu0 %v3428_v0 }
 0xa8b   :  { %3019 = vmatpush3.msra.mxu0 %v4090_v60 }
 0xa8c   :  { %3020 = vmatprep.subr.mxu0 %v3428_v0 }
 0xa8d   :  { %3021 = vmatpush3.msra.mxu0 %v4097_v62 }
 0xa8e   :  { %3022 = vmatprep.subr.mxu0 %v3428_v0 }
 0xa8f   :  { %3023 = vmatpush3.msra.mxu0 %v4101_v63 }
 0xa90   :  { %3024 = vmatprep.subr.mxu0 %v3428_v0 }
 0xa91   :  { %3025 = vmatpush3.msra.mxu0 %v4106_v1 }
 0xa92   :  { %3026 = vmatprep.subr.mxu0 %v3428_v0 }
 0xa93   :  { %3027 = vmatpush3.msra.mxu0 %v4110_v2 }
 0xa94   :  { %3028 = vmatprep.subr.mxu0 %v3428_v0 }
 0xa95   :  { %3029 = vmatpush3.msra.mxu0 %v4114_v3 }
 0xa96   :  { %3030 = vmatprep.subr.mxu0 %v3428_v0 }
 0xa97   :  { %3031 = vmatpush3.msra.mxu0 %v4118_v6 }
 0xa98   :  { %3070 = vmatprep.subr.mxu0 %v3428_v0 }
 0xb18   :  { %v1023_v34 = vpop.f32.mrf.mxu0 }
 0xb19   :  { %v1027_v22 = vadd.f32 %v1023_v34, %v940_v32 }
 0xb1a   :  { %v2894_v23 = vpop.f32.mrf.mxu0 }
 0xb1b   :  { %v2229_v25 = vmul.f32 -1.442695, %v1027_v22 }
 0xb1d   :  { %3304 = vpow2.f32 %v2229_v25 }
 0xb2a   :  { %v3305_v27 = vpop.eup %3304 }
 0xb2b   :  { %v1031_v29 = vadd.f32 1.0, %v3305_v27  ;;  %v2233_v27 = vld [vmem:[%s4463_s2 + $0x2] sm:$0x3] }
 0xb2d   :  { %3306 = vrcp.f32 %v1031_v29 }
 0xb38   :  { %v1238_v9 = vpop.f32.mrf.mxu0 }
 0xb3a   :  { %v3307_v37 = vpop.eup %3306  ;;  %v2964_v11 = vpop.f32.mrf.mxu0 }
 0xb3b   :  { %v1034_v39 = vmul.f32 2.0, %v3307_v37 }
 0xb3d   :  { %v2230_v42 = vadd.f32 -1.0, %v1034_v39 }
 0xb3f   :  { %v4037_v45 = vsel %vm3749_vm3, %v2230_v42, %v3307_v37 }
 0xb40   :  { %1039 = vrot.lane.b32.xlu0 %v4037_v45, %s3432_s25  ;;  %1037 = vrot.lane.b32.xlu1 %v4037_v45, %s3431_s24 }
 0xb44   :  { %1041 = vrot.lane.b32.xlu1 %v4037_v45, %s3430_s5 }
 0xbb2   :  { %v1040_v10 = vpop.permute.xlu0 %1039  ;;  %v1038_v12 = vpop.permute.xlu1 %1037 }
 0xbb3   :  { %v1044_v14 = vmul.f32 %v1040_v10, %v4037_v45  ;;  %v1043_v16 = vmul.f32 %v1038_v12, %v3996_v19 }
 0xbb5   :  { %v1045_v18 = vadd.f32 %v1044_v14, %v1043_v16 }
 0xbb6   :  { %v1042_v4 = vpop.permute.xlu1 %1041 }
 0xbb7   :  { %3308 = vtanh.f32 %v1045_v18 }
 0xbc4   :  { %v3309_v20 = vpop.eup %3308 }
 0xbc5   :  { %v1047_v5 = vmul.f32 %v3309_v20, %v1042_v4 }
 0xbc7   :  { %1048 = vst [vmem:[#allocation3 + $0xe] sm:$0x3] %v1047_v5 }
 0xbce   :  { %v1050_v7 = vld [vmem:[#allocation3 + $0x8] sm:$0xff] }
 0xbcf   :  { %2928 = vmatmul.mubr.f32.vlgmr.msra.gmra.mxu1 %v1050_v7 }
 0xbd0   :  { %2966 = vmatpush3.msra.mxu1 %v4019_v38  ;;  %2997 = vmatprep.mubr.msk.f32.mxu1 %vm3429_vm0, %v3428_v0 }
 0xbd1   :  { %2967 = vmatprep.subr.mxu1 %v3428_v0 }
 0xbd2   :  { %2968 = vmatpush3.msra.mxu1 %v4026_v41 }
 0xbd3   :  { %2969 = vmatprep.subr.mxu1 %v3428_v0 }
 0xbd4   :  { %2970 = vmatpush3.msra.mxu1 %v4033_v44 }
 0xbd5   :  { %2971 = vmatprep.subr.mxu1 %v3428_v0 }
 0xbd6   :  { %2972 = vmatpush3.msra.mxu1 %v4047_v47 }
 0xbd7   :  { %2973 = vmatprep.subr.mxu1 %v3428_v0 }
 0xbd8   :  { %2974 = vmatpush3.msra.mxu1 %v4054_v49 }
 0xbd9   :  { %2975 = vmatprep.subr.mxu1 %v3428_v0 }
 0xbda   :  { %2976 = vmatpush3.msra.mxu1 %v4062_v51 }
 0xbdb   :  { %2977 = vmatprep.subr.mxu1 %v3428_v0 }
 0xbdc   :  { %2978 = vmatpush3.msra.mxu1 %v4069_v54 }
 0xbdd   :  { %2979 = vmatprep.subr.mxu1 %v3428_v0 }
 0xbde   :  { %2980 = vmatpush3.msra.mxu1 %v4076_v56 }
 0xbdf   :  { %2981 = vmatprep.subr.mxu1 %v3428_v0 }
 0xbe0   :  { %2982 = vmatpush3.msra.mxu1 %v4083_v58 }
 0xbe1   :  { %2983 = vmatprep.subr.mxu1 %v3428_v0 }
 0xbe2   :  { %2984 = vmatpush3.msra.mxu1 %v4090_v60 }
 0xbe3   :  { %2985 = vmatprep.subr.mxu1 %v3428_v0 }
 0xbe4   :  { %2986 = vmatpush3.msra.mxu1 %v4097_v62 }
 0xbe5   :  { %2987 = vmatprep.subr.mxu1 %v3428_v0 }
 0xbe6   :  { %2988 = vmatpush3.msra.mxu1 %v4101_v63 }
 0xbe7   :  { %2989 = vmatprep.subr.mxu1 %v3428_v0 }
 0xbe8   :  { %2990 = vmatpush3.msra.mxu1 %v4106_v1 }
 0xbe9   :  { %2991 = vmatprep.subr.mxu1 %v3428_v0 }
 0xbea   :  { %2992 = vmatpush3.msra.mxu1 %v4110_v2 }
 0xbeb   :  { %2993 = vmatprep.subr.mxu1 %v3428_v0 }
 0xbec   :  { %2994 = vmatpush3.msra.mxu1 %v4114_v3 }
 0xbed   :  { %2995 = vmatprep.subr.mxu1 %v3428_v0 }
 0xbee   :  { %2996 = vmatpush3.msra.mxu1 %v4118_v6 }
 0xbef   :  { %3035 = vmatprep.subr.mxu1 %v3428_v0 }
 0xc8f   :  { %v2929_v15 = vpop.f32.mrf.mxu1 }
 0xc90   :  { %v1146_v17 = vadd.f32 %v2929_v15, %v2231_v13 }
 0xc91   :  { %v1140_v19 = vpop.f32.mrf.mxu1 }
 0xc92   :  { %1150 = vst [vmem:[#allocation2 + $0x8] sm:$0xff] %v1146_v17  ;;  %v1141_v21 = vadd.f32 %v2231_v13, %v1140_v19 }
 0xc94   :  { %1149 = vst [vmem:[#allocation2] sm:$0xff] %v1141_v21 }
 0xc9b   :  { %v1155_v24 = vld [vmem:[#allocation2] sm:$0x3]  ;;  %v1264_v42 = vld [vmem:[#allocation2 + $0x2] sm:$0x3]  ;;  %v1373_v5 = vld [vmem:[#allocation2 + $0x4] sm:$0x3] }
 0xc9c   :  { %v1242_v26 = vadd.f32 %v1238_v9, %v1155_v24 }
 0xc9e   :  { %v2234_v28 = vmul.f32 -1.442695, %v1242_v26 }
 0xca0   :  { %3310 = vpow2.f32 %v2234_v28 }
 0xcad   :  { %v3311_v30 = vpop.eup %3310 }
 0xcae   :  { %v1246_v32 = vadd.f32 1.0, %v3311_v30 }
 0xcb0   :  { %3312 = vrcp.f32 %v1246_v32 }
 0xcbd   :  { %v3313_v34 = vpop.eup %3312 }
 0xcbe   :  { %v1249_v22 = vmul.f32 2.0, %v3313_v34 }
 0xcc0   :  { %v2235_v23 = vadd.f32 -1.0, %v1249_v22 }
 0xcc2   :  { %v1251_v25 = vsel %vm3749_vm3, %v2235_v23, %v3313_v34 }
 0xcc3   :  { %1254 = vrot.lane.b32.xlu1 %v1251_v25, %s3432_s25  ;;  %1252 = vrot.lane.b32.xlu0 %v1251_v25, %s3431_s24 }
 0xcc7   :  { %1256 = vrot.lane.b32.xlu0 %v1251_v25, %s3430_s5 }
 0xd35   :  { %v1255_v29 = vpop.permute.xlu1 %1254  ;;  %v1253_v31 = vpop.permute.xlu0 %1252 }
 0xd36   :  { %v1259_v33 = vmul.f32 %v1255_v29, %v1251_v25  ;;  %v1258_v35 = vmul.f32 %v2233_v27, %v1253_v31  ;;  %v1482_v29 = vld [vmem:[#allocation2 + $0x6] sm:$0x3] }
 0xd38   :  { %v1260_v36 = vadd.f32 %v1259_v33, %v1258_v35 }
 0xd39   :  { %v1257_v39 = vpop.permute.xlu0 %1256 }
 0xd3a   :  { %3314 = vtanh.f32 %v1260_v36 }
 0xd47   :  { %v3315_v37 = vpop.eup %3314 }
 0xd48   :  { %v1262_v40 = vmul.f32 %v3315_v37, %v1257_v39 }
 0xd4a   :  { %1263 = vst [vmem:[#allocation3] sm:$0x3] %v1262_v40  ;;  %2998 = vmatmul.mubr.f32.vlgmr.msra.gmra.mxu1 %v1262_v40 }
 0xd4b   :  { %3036 = vmatpush3.msra.mxu1 %v4019_v38  ;;  %3067 = vmatprep.mubr.msk.f32.mxu1 %vm3429_vm0, %v3428_v0 }
 0xd4c   :  { %3037 = vmatprep.subr.mxu1 %v3428_v0 }
 0xd4d   :  { %3038 = vmatpush3.msra.mxu1 %v4026_v41 }
 0xd4e   :  { %3039 = vmatprep.subr.mxu1 %v3428_v0 }
 0xd4f   :  { %3040 = vmatpush3.msra.mxu1 %v4033_v44 }
 0xd50   :  { %3041 = vmatprep.subr.mxu1 %v3428_v0 }
 0xd51   :  { %3042 = vmatpush3.msra.mxu1 %v4047_v47 }
 0xd52   :  { %3043 = vmatprep.subr.mxu1 %v3428_v0 }
 0xd53   :  { %3044 = vmatpush3.msra.mxu1 %v4054_v49 }
 0xd54   :  { %3045 = vmatprep.subr.mxu1 %v3428_v0 }
 0xd55   :  { %3046 = vmatpush3.msra.mxu1 %v4062_v51 }
 0xd56   :  { %3047 = vmatprep.subr.mxu1 %v3428_v0 }
 0xd57   :  { %3048 = vmatpush3.msra.mxu1 %v4069_v54 }
 0xd58   :  { %3049 = vmatprep.subr.mxu1 %v3428_v0 }
 0xd59   :  { %3050 = vmatpush3.msra.mxu1 %v4076_v56 }
 0xd5a   :  { %3051 = vmatprep.subr.mxu1 %v3428_v0 }
 0xd5b   :  { %3052 = vmatpush3.msra.mxu1 %v4083_v58 }
 0xd5c   :  { %3053 = vmatprep.subr.mxu1 %v3428_v0 }
 0xd5d   :  { %3054 = vmatpush3.msra.mxu1 %v4090_v60 }
 0xd5e   :  { %3055 = vmatprep.subr.mxu1 %v3428_v0 }
 0xd5f   :  { %3056 = vmatpush3.msra.mxu1 %v4097_v62 }
 0xd60   :  { %3057 = vmatprep.subr.mxu1 %v3428_v0 }
 0xd61   :  { %3058 = vmatpush3.msra.mxu1 %v4101_v63 }
 0xd62   :  { %3059 = vmatprep.subr.mxu1 %v3428_v0 }
 0xd63   :  { %3060 = vmatpush3.msra.mxu1 %v4106_v1 }
 0xd64   :  { %3061 = vmatprep.subr.mxu1 %v3428_v0 }
 0xd65   :  { %3062 = vmatpush3.msra.mxu1 %v4110_v2 }
 0xd66   :  { %3063 = vmatprep.subr.mxu1 %v3428_v0 }
 0xd67   :  { %3064 = vmatpush3.msra.mxu1 %v4114_v3 }
 0xd68   :  { %3065 = vmatprep.subr.mxu1 %v3428_v0 }
 0xd69   :  { %3066 = vmatpush3.msra.mxu1 %v4118_v6 }
 0xd6a   :  { %3105 = vmatprep.subr.mxu1 %v3428_v0 }
 0xe0a   :  { %v1347_v43 = vpop.f32.mrf.mxu1 }
 0xe0b   :  { %v1351_v45 = vadd.f32 %v1347_v43, %v1264_v42 }
 0xe0c   :  { %v2999_v46 = vpop.f32.mrf.mxu1 }
 0xe0d   :  { %v2236_v48 = vmul.f32 -1.442695, %v1351_v45 }
 0xe0f   :  { %3316 = vpow2.f32 %v2236_v48 }
 0xe1c   :  { %v3317_v50 = vpop.eup %3316 }
 0xe1d   :  { %v1355_v53 = vadd.f32 1.0, %v3317_v50 }
 0xe1f   :  { %3318 = vrcp.f32 %v1355_v53 }
 0xe2c   :  { %v3319_v55 = vpop.eup %3318 }
 0xe2d   :  { %v1358_v57 = vmul.f32 2.0, %v3319_v55 }
 0xe2f   :  { %v2237_v59 = vadd.f32 -1.0, %v1358_v57 }
 0xe31   :  { %v1360_v61 = vsel %vm3749_vm3, %v2237_v59, %v3319_v55 }
 0xe32   :  { %1363 = vrot.lane.b32.xlu0 %v1360_v61, %s3432_s25  ;;  %1361 = vrot.lane.b32.xlu1 %v1360_v61, %s3431_s24 }
 0xe36   :  { %1365 = vrot.lane.b32.xlu1 %v1360_v61, %s3430_s5 }
 0xea4   :  { %v1364_v8 = vpop.permute.xlu0 %1363  ;;  %v1362_v10 = vpop.permute.xlu1 %1361 }
 0xea5   :  { %v1368_v12 = vmul.f32 %v1364_v8, %v1360_v61  ;;  %v1367_v14 = vmul.f32 %v1362_v10, %v1260_v36 }
 0xea7   :  { %v1369_v16 = vadd.f32 %v1368_v12, %v1367_v14  ;;  %v1700_v14 = vld [vmem:[#allocation2 + $0xa] sm:$0x3] }
 0xea8   :  { %v1366_v20 = vpop.permute.xlu1 %1365 }
 0xea9   :  { %3320 = vtanh.f32 %v1369_v16 }
 0xeb6   :  { %v3321_v18 = vpop.eup %3320 }
 0xeb7   :  { %v1371_v4 = vmul.f32 %v3321_v18, %v1366_v20 }
 0xeb9   :  { %1372 = vst [vmem:[#allocation3 + $0x2] sm:$0x3] %v1371_v4  ;;  %3033 = vmatmul.mubr.f32.vlgmr.msra.gmra.mxu0 %v1371_v4 }
 0xeba   :  { %3071 = vmatpush3.msra.mxu0 %v4019_v38  ;;  %3102 = vmatprep.mubr.msk.f32.mxu0 %vm3429_vm0, %v3428_v0 }
 0xebb   :  { %3072 = vmatprep.subr.mxu0 %v3428_v0 }
 0xebc   :  { %3073 = vmatpush3.msra.mxu0 %v4026_v41 }
 0xebd   :  { %3074 = vmatprep.subr.mxu0 %v3428_v0 }
 0xebe   :  { %3075 = vmatpush3.msra.mxu0 %v4033_v44 }
 0xebf   :  { %3076 = vmatprep.subr.mxu0 %v3428_v0 }
 0xec0   :  { %3077 = vmatpush3.msra.mxu0 %v4047_v47 }
 0xec1   :  { %3078 = vmatprep.subr.mxu0 %v3428_v0 }
 0xec2   :  { %3079 = vmatpush3.msra.mxu0 %v4054_v49 }
 0xec3   :  { %3080 = vmatprep.subr.mxu0 %v3428_v0 }
 0xec4   :  { %3081 = vmatpush3.msra.mxu0 %v4062_v51 }
 0xec5   :  { %3082 = vmatprep.subr.mxu0 %v3428_v0 }
 0xec6   :  { %3083 = vmatpush3.msra.mxu0 %v4069_v54 }
 0xec7   :  { %3084 = vmatprep.subr.mxu0 %v3428_v0 }
 0xec8   :  { %3085 = vmatpush3.msra.mxu0 %v4076_v56 }
 0xec9   :  { %3086 = vmatprep.subr.mxu0 %v3428_v0 }
 0xeca   :  { %3087 = vmatpush3.msra.mxu0 %v4083_v58 }
 0xecb   :  { %3088 = vmatprep.subr.mxu0 %v3428_v0 }
 0xecc   :  { %3089 = vmatpush3.msra.mxu0 %v4090_v60 }
 0xecd   :  { %3090 = vmatprep.subr.mxu0 %v3428_v0 }
 0xece   :  { %3091 = vmatpush3.msra.mxu0 %v4097_v62 }
 0xecf   :  { %3092 = vmatprep.subr.mxu0 %v3428_v0 }
 0xed0   :  { %3093 = vmatpush3.msra.mxu0 %v4101_v63 }
 0xed1   :  { %3094 = vmatprep.subr.mxu0 %v3428_v0 }
 0xed2   :  { %3095 = vmatpush3.msra.mxu0 %v4106_v1 }
 0xed3   :  { %3096 = vmatprep.subr.mxu0 %v3428_v0 }
 0xed4   :  { %3097 = vmatpush3.msra.mxu0 %v4110_v2 }
 0xed5   :  { %3098 = vmatprep.subr.mxu0 %v3428_v0 }
 0xed6   :  { %3099 = vmatpush3.msra.mxu0 %v4114_v3 }
 0xed7   :  { %3100 = vmatprep.subr.mxu0 %v3428_v0 }
 0xed8   :  { %3101 = vmatpush3.msra.mxu0 %v4118_v6 }
 0xed9   :  { %3140 = vmatprep.subr.mxu0 %v3428_v0 }
 0xf79   :  { %v1456_v7 = vpop.f32.mrf.mxu0 }
 0xf7a   :  { %v1460_v9 = vadd.f32 %v1456_v7, %v1373_v5 }
 0xf7b   :  { %v3034_v11 = vpop.f32.mrf.mxu0 }
 0xf7c   :  { %v2238_v13 = vmul.f32 -1.442695, %v1460_v9 }
 0xf7e   :  { %3322 = vpow2.f32 %v2238_v13 }
 0xf8b   :  { %v3323_v15 = vpop.eup %3322 }
 0xf8c   :  { %v1464_v17 = vadd.f32 1.0, %v3323_v15 }
 0xf8e   :  { %3324 = vrcp.f32 %v1464_v17 }
 0xf9b   :  { %v3325_v19 = vpop.eup %3324 }
 0xf9c   :  { %v1467_v21 = vmul.f32 2.0, %v3325_v19 }
 0xf9e   :  { %v2239_v24 = vadd.f32 -1.0, %v1467_v21 }
 0xfa0   :  { %v1469_v26 = vsel %vm3749_vm3, %v2239_v24, %v3325_v19 }
 0xfa1   :  { %1472 = vrot.lane.b32.xlu1 %v1469_v26, %s3432_s25  ;;  %1470 = vrot.lane.b32.xlu0 %v1469_v26, %s3431_s24 }
 0xfa5   :  { %1474 = vrot.lane.b32.xlu0 %v1469_v26, %s3430_s5 }
0x1013   :  { %v1473_v28 = vpop.permute.xlu1 %1472  ;;  %v1471_v30 = vpop.permute.xlu0 %1470 }
0x1014   :  { %v1477_v32 = vmul.f32 %v1473_v28, %v1469_v26  ;;  %v1476_v34 = vmul.f32 %v1471_v30, %v1369_v16 }
0x1016   :  { %v1478_v22 = vadd.f32 %v1477_v32, %v1476_v34 }
0x1017   :  { %v1475_v25 = vpop.permute.xlu0 %1474 }
0x1018   :  { %3326 = vtanh.f32 %v1478_v22 }
0x1025   :  { %v3327_v23 = vpop.eup %3326 }
0x1026   :  { %v1480_v27 = vmul.f32 %v3327_v23, %v1475_v25  ;;  %v1933_v23 = vld [vmem:[#allocation4 + $0x70] sm:$0xff]  ;;  %v1932_v25 = vld [vmem:[#allocation4 + $0x68] sm:$0xff] }
0x1028   :  { %1481 = vst [vmem:[#allocation3 + $0x4] sm:$0x3] %v1480_v27  ;;  %3068 = vmatmul.mubr.f32.vlgmr.msra.gmra.mxu1 %v1480_v27  ;;  %v1931_v27 = vld [vmem:[#allocation4 + $0x60] sm:$0xff] }
0x1029   :  { %3106 = vmatpush3.msra.mxu1 %v4019_v38  ;;  %3137 = vmatprep.mubr.msk.f32.mxu1 %vm3429_vm0, %v3428_v0 }
0x102a   :  { %3107 = vmatprep.subr.mxu1 %v3428_v0 }
0x102b   :  { %3108 = vmatpush3.msra.mxu1 %v4026_v41 }
0x102c   :  { %3109 = vmatprep.subr.mxu1 %v3428_v0 }
0x102d   :  { %3110 = vmatpush3.msra.mxu1 %v4033_v44 }
0x102e   :  { %3111 = vmatprep.subr.mxu1 %v3428_v0 }
0x102f   :  { %3112 = vmatpush3.msra.mxu1 %v4047_v47 }
0x1030   :  { %3113 = vmatprep.subr.mxu1 %v3428_v0 }
0x1031   :  { %3114 = vmatpush3.msra.mxu1 %v4054_v49 }
0x1032   :  { %3115 = vmatprep.subr.mxu1 %v3428_v0 }
0x1033   :  { %3116 = vmatpush3.msra.mxu1 %v4062_v51 }
0x1034   :  { %3117 = vmatprep.subr.mxu1 %v3428_v0 }
0x1035   :  { %3118 = vmatpush3.msra.mxu1 %v4069_v54 }
0x1036   :  { %3119 = vmatprep.subr.mxu1 %v3428_v0 }
0x1037   :  { %3120 = vmatpush3.msra.mxu1 %v4076_v56 }
0x1038   :  { %3121 = vmatprep.subr.mxu1 %v3428_v0 }
0x1039   :  { %3122 = vmatpush3.msra.mxu1 %v4083_v58 }
0x103a   :  { %3123 = vmatprep.subr.mxu1 %v3428_v0 }
0x103b   :  { %3124 = vmatpush3.msra.mxu1 %v4090_v60 }
0x103c   :  { %3125 = vmatprep.subr.mxu1 %v3428_v0 }
0x103d   :  { %3126 = vmatpush3.msra.mxu1 %v4097_v62 }
0x103e   :  { %3127 = vmatprep.subr.mxu1 %v3428_v0 }
0x103f   :  { %3128 = vmatpush3.msra.mxu1 %v4101_v63 }
0x1040   :  { %3129 = vmatprep.subr.mxu1 %v3428_v0 }
0x1041   :  { %3130 = vmatpush3.msra.mxu1 %v4106_v1 }
0x1042   :  { %3131 = vmatprep.subr.mxu1 %v3428_v0 }
0x1043   :  { %3132 = vmatpush3.msra.mxu1 %v4110_v2 }
0x1044   :  { %3133 = vmatprep.subr.mxu1 %v3428_v0 }
0x1045   :  { %3134 = vmatpush3.msra.mxu1 %v4114_v3 }
0x1046   :  { %3135 = vmatprep.subr.mxu1 %v3428_v0 }
0x1047   :  { %3136 = vmatpush3.msra.mxu1 %v4118_v6 }
0x1048   :  { %3175 = vmatprep.subr.mxu1 %v3428_v0 }
0x10e8   :  { %v1565_v31 = vpop.f32.mrf.mxu1 }
0x10e9   :  { %v1569_v33 = vadd.f32 %v1565_v31, %v1482_v29  ;;  %v1930_v29 = vld [vmem:[#allocation4 + $0x58] sm:$0xff]  ;;  %v1929_v31 = vld [vmem:[#allocation4 + $0x50] sm:$0xff] }
0x10ea   :  { %v3069_v35 = vpop.f32.mrf.mxu1 }
0x10eb   :  { %v2240_v36 = vmul.f32 -1.442695, %v1569_v33  ;;  %v1809_v33 = vld [vmem:[#allocation2 + $0xc] sm:$0x3] }
0x10ed   :  { %3328 = vpow2.f32 %v2240_v36 }
0x10fa   :  { %v3329_v37 = vpop.eup %3328 }
0x10fb   :  { %v1573_v39 = vadd.f32 1.0, %v3329_v37 }
0x10fd   :  { %3330 = vrcp.f32 %v1573_v39 }
0x110a   :  { %v3331_v40 = vpop.eup %3330 }
0x110b   :  { %v1576_v42 = vmul.f32 2.0, %v3331_v40 }
0x110d   :  { %v2241_v43 = vadd.f32 -1.0, %v1576_v42 }
0x110f   :  { %v1578_v45 = vsel %vm3749_vm3, %v2241_v43, %v3331_v40  ;;  %v1928_v43 = vld [vmem:[#allocation4 + $0x48] sm:$0xff] }
0x1110   :  { %1581 = vrot.lane.b32.xlu0 %v1578_v45, %s3432_s25  ;;  %1579 = vrot.lane.b32.xlu1 %v1578_v45, %s3431_s24 }
0x1114   :  { %1583 = vrot.lane.b32.xlu1 %v1578_v45, %s3430_s5 }
0x1182   :  { %v1582_v46 = vpop.permute.xlu0 %1581  ;;  %v1580_v48 = vpop.permute.xlu1 %1579 }
0x1183   :  { %v1586_v50 = vmul.f32 %v1582_v46, %v1578_v45  ;;  %v1585_v53 = vmul.f32 %v1580_v48, %v1478_v22  ;;  %v1934_v22 = vld [vmem:[#allocation4 + $0x78] sm:$0xff]  ;;  %v1927_v45 = vld [vmem:[#allocation4 + $0x40] sm:$0xff] }
0x1184   :  { %v1926_v46 = vld [vmem:[#allocation4 + $0x38] sm:$0xff] }
0x1185   :  { %v1587_v55 = vadd.f32 %v1586_v50, %v1585_v53  ;;  %v1925_v50 = vld [vmem:[#allocation4 + $0x30] sm:$0xff] }
0x1186   :  { %v1584_v59 = vpop.permute.xlu1 %1583 }
0x1187   :  { %3332 = vtanh.f32 %v1587_v55 }
0x1194   :  { %v3333_v57 = vpop.eup %3332 }
0x1195   :  { %v1589_v61 = vmul.f32 %v3333_v57, %v1584_v59  ;;  %v1923_v59 = vld [vmem:[#allocation4 + $0x20] sm:$0xff] }
0x1197   :  { %1590 = vst [vmem:[#allocation3 + $0x6] sm:$0x3] %v1589_v61  ;;  %3103 = vmatmul.mubr.f32.vlgmr.msra.gmra.mxu0 %v1589_v61 }
0x1198   :  { %3141 = vmatpush3.msra.mxu0 %v4019_v38  ;;  %3172 = vmatprep.mubr.msk.f32.mxu0 %vm3429_vm0, %v3428_v0  ;;  %v1591_v38 = vld [vmem:[#allocation2 + $0x8] sm:$0x3] }
0x1199   :  { %3142 = vmatprep.subr.mxu0 %v3428_v0 }
0x119a   :  { %3143 = vmatpush3.msra.mxu0 %v4026_v41 }
0x119b   :  { %3144 = vmatprep.subr.mxu0 %v3428_v0 }
0x119c   :  { %3145 = vmatpush3.msra.mxu0 %v4033_v44 }
0x119d   :  { %3146 = vmatprep.subr.mxu0 %v3428_v0 }
0x119e   :  { %3147 = vmatpush3.msra.mxu0 %v4047_v47  ;;  %v2027_v34 = vld [vmem:[#allocation3] sm:$0xff] }
0x119f   :  { %3148 = vmatprep.subr.mxu0 %v3428_v0 }
0x11a0   :  { %3149 = vmatpush3.msra.mxu0 %v4054_v49 }
0x11a1   :  { %3150 = vmatprep.subr.mxu0 %v3428_v0 }
0x11a2   :  { %3151 = vmatpush3.msra.mxu0 %v4062_v51 }
0x11a3   :  { %3152 = vmatprep.subr.mxu0 %v3428_v0 }
0x11a4   :  { %3153 = vmatpush3.msra.mxu0 %v4069_v54 }
0x11a5   :  { %3154 = vmatprep.subr.mxu0 %v3428_v0 }
0x11a6   :  { %3155 = vmatpush3.msra.mxu0 %v4076_v56 }
0x11a7   :  { %3156 = vmatprep.subr.mxu0 %v3428_v0 }
0x11a8   :  { %3157 = vmatpush3.msra.mxu0 %v4083_v58 }
0x11a9   :  { %3158 = vmatprep.subr.mxu0 %v3428_v0 }
0x11aa   :  { %3159 = vmatpush3.msra.mxu0 %v4090_v60 }
0x11ab   :  { %3160 = vmatprep.subr.mxu0 %v3428_v0 }
0x11ac   :  { %3161 = vmatpush3.msra.mxu0 %v4097_v62 }
0x11ad   :  { %3162 = vmatprep.subr.mxu0 %v3428_v0 }
0x11ae   :  { %3163 = vmatpush3.msra.mxu0 %v4101_v63 }
0x11af   :  { %3164 = vmatprep.subr.mxu0 %v3428_v0 }
0x11b0   :  { %3165 = vmatpush3.msra.mxu0 %v4106_v1 }
0x11b1   :  { %3166 = vmatprep.subr.mxu0 %v3428_v0 }
0x11b2   :  { %3167 = vmatpush3.msra.mxu0 %v4110_v2 }
0x11b3   :  { %3168 = vmatprep.subr.mxu0 %v3428_v0 }
0x11b4   :  { %3169 = vmatpush3.msra.mxu0 %v4114_v3 }
0x11b5   :  { %3170 = vmatprep.subr.mxu0 %v3428_v0 }
0x11b6   :  { %3171 = vmatpush3.msra.mxu0 %v4118_v6 }
0x1257   :  { %v1674_v41 = vpop.f32.mrf.mxu0 }
0x1258   :  { %v1678_v44 = vadd.f32 %v1674_v41, %v1591_v38  ;;  %v1922_v38 = vld [vmem:[#allocation4 + $0x18] sm:$0xff]  ;;  %v1921_v41 = vld [vmem:[#allocation4 + $0x10] sm:$0xff] }
0x1259   :  { %v3104_v47 = vpop.f32.mrf.mxu0 }
0x125a   :  { %v2242_v49 = vmul.f32 -1.442695, %v1678_v44  ;;  %v1920_v44 = vld [vmem:[#allocation4 + $0x8] sm:$0xff]  ;;  %v1919_v47 = vld [vmem:[#allocation4] sm:$0xff] }
0x125c   :  { %3334 = vpow2.f32 %v2242_v49 }
0x1269   :  { %v3335_v51 = vpop.eup %3334 }
0x126a   :  { %v1682_v54 = vadd.f32 1.0, %v3335_v51 }
0x126c   :  { %3336 = vrcp.f32 %v1682_v54 }
0x1279   :  { %v3337_v56 = vpop.eup %3336 }
0x127a   :  { %v1685_v58 = vmul.f32 2.0, %v3337_v56 }
0x127c   :  { %v2243_v60 = vadd.f32 -1.0, %v1685_v58 }
0x127e   :  { %v1687_v62 = vsel %vm3749_vm3, %v2243_v60, %v3337_v56 }
0x127f   :  { %1690 = vrot.lane.b32.xlu1 %v1687_v62, %s3432_s25  ;;  %1688 = vrot.lane.b32.xlu0 %v1687_v62, %s3431_s24 }
0x1283   :  { %1692 = vrot.lane.b32.xlu0 %v1687_v62, %s3430_s5 }
0x12f1   :  { %v1691_v63 = vpop.permute.xlu1 %1690  ;;  %v1689_v1 = vpop.permute.xlu0 %1688 }
0x12f2   :  { %v1695_v2 = vmul.f32 %v1691_v63, %v1687_v62  ;;  %v1694_v3 = vmul.f32 %v1689_v1, %v1587_v55  ;;  %v1924_v55 = vld [vmem:[#allocation4 + $0x28] sm:$0xff]  ;;  %v2044_v1 = vld [vmem:[%s4470_s9 + $0x78] sm:$0xff] }
0x12f3   :  { %3210 = vmatprep.subr.mxu0 %v2044_v1 }
0x12f4   :  { %v1696_v6 = vadd.f32 %v1695_v2, %v1694_v3  ;;  %v2043_v2 = vld [vmem:[%s4470_s9 + $0x70] sm:$0xff]  ;;  %v1918_v3 = vld [vmem:[#allocation2 + $0xe] sm:$0x3] }
0x12f5   :  { %v1693_v10 = vpop.permute.xlu0 %1692 }
0x12f6   :  { %3338 = vtanh.f32 %v1696_v6 }
0x1303   :  { %v3339_v8 = vpop.eup %3338 }
0x1304   :  { %v1698_v12 = vmul.f32 %v3339_v8, %v1693_v10 }
0x1306   :  { %1699 = vst [vmem:[#allocation3 + $0x8] sm:$0x3] %v1698_v12  ;;  %3138 = vmatmul.mubr.f32.vlgmr.msra.gmra.mxu1 %v1698_v12 }
0x1307   :  { %3207 = vmatprep.mubr.msk.f32.mxu1 %vm3429_vm0, %v3428_v0  ;;  %3176 = vmatpush3.msra.mxu1 %v1934_v22 }
0x1308   :  { %3177 = vmatprep.subr.mxu1 %v3428_v0 }
0x1309   :  { %3178 = vmatpush3.msra.mxu1 %v1933_v23 }
0x130a   :  { %3179 = vmatprep.subr.mxu1 %v3428_v0 }
0x130b   :  { %3180 = vmatpush3.msra.mxu1 %v1932_v25 }
0x130c   :  { %3181 = vmatprep.subr.mxu1 %v3428_v0 }
0x130d   :  { %3182 = vmatpush3.msra.mxu1 %v1931_v27 }
0x130e   :  { %3183 = vmatprep.subr.mxu1 %v3428_v0 }
0x130f   :  { %3184 = vmatpush3.msra.mxu1 %v1930_v29 }
0x1310   :  { %3185 = vmatprep.subr.mxu1 %v3428_v0 }
0x1311   :  { %3186 = vmatpush3.msra.mxu1 %v1929_v31 }
0x1312   :  { %3187 = vmatprep.subr.mxu1 %v3428_v0 }
0x1313   :  { %3188 = vmatpush3.msra.mxu1 %v1928_v43 }
0x1314   :  { %3189 = vmatprep.subr.mxu1 %v3428_v0 }
0x1315   :  { %3190 = vmatpush3.msra.mxu1 %v1927_v45 }
0x1316   :  { %3191 = vmatprep.subr.mxu1 %v3428_v0 }
0x1317   :  { %3192 = vmatpush3.msra.mxu1 %v1926_v46 }
0x1318   :  { %3193 = vmatprep.subr.mxu1 %v3428_v0 }
0x1319   :  { %3194 = vmatpush3.msra.mxu1 %v1925_v50 }
0x131a   :  { %3195 = vmatprep.subr.mxu1 %v3428_v0 }
0x131b   :  { %3196 = vmatpush3.msra.mxu1 %v1924_v55 }
0x131c   :  { %3197 = vmatprep.subr.mxu1 %v3428_v0 }
0x131d   :  { %3198 = vmatpush3.msra.mxu1 %v1923_v59 }
0x131e   :  { %3199 = vmatprep.subr.mxu1 %v3428_v0 }
0x131f   :  { %3200 = vmatpush3.msra.mxu1 %v1922_v38 }
0x1320   :  { %3201 = vmatprep.subr.mxu1 %v3428_v0 }
0x1321   :  { %3202 = vmatpush3.msra.mxu1 %v1921_v41 }
0x1322   :  { %3203 = vmatprep.subr.mxu1 %v3428_v0 }
0x1323   :  { %3204 = vmatpush3.msra.mxu1 %v1920_v44 }
0x1324   :  { %3205 = vmatprep.subr.mxu1 %v3428_v0 }
0x1325   :  { %3206 = vmatpush3.msra.mxu1 %v1919_v47 }
0x1326   :  { %3245 = vmatprep.subr.mxu1 %v3428_v0 }
0x13c6   :  { %v1783_v16 = vpop.f32.mrf.mxu1 }
0x13c7   :  { %v1787_v18 = vadd.f32 %v1783_v16, %v1700_v14 }
0x13c8   :  { %v3139_v20 = vpop.f32.mrf.mxu1 }
0x13c9   :  { %v2244_v4 = vmul.f32 -1.442695, %v1787_v18  ;;  %v2042_v18 = vld [vmem:[%s4470_s9 + $0x68] sm:$0xff]  ;;  %v2041_v20 = vld [vmem:[%s4470_s9 + $0x60] sm:$0xff] }
0x13cb   :  { %3340 = vpow2.f32 %v2244_v4  ;;  %v2040_v4 = vld [vmem:[%s4470_s9 + $0x58] sm:$0xff] }
0x13d8   :  { %v3341_v5 = vpop.eup %3340 }
0x13d9   :  { %v1791_v7 = vadd.f32 1.0, %v3341_v5  ;;  %v2039_v5 = vld [vmem:[%s4470_s9 + $0x50] sm:$0xff] }
0x13db   :  { %3342 = vrcp.f32 %v1791_v7 }
0x13e8   :  { %v3343_v9 = vpop.eup %3342 }
0x13e9   :  { %v1794_v11 = vmul.f32 2.0, %v3343_v9 }
0x13eb   :  { %v2245_v13 = vadd.f32 -1.0, %v1794_v11  ;;  %v2038_v11 = vld [vmem:[%s4470_s9 + $0x48] sm:$0xff] }
0x13ed   :  { %v1796_v15 = vsel %vm3749_vm3, %v2245_v13, %v3343_v9 }
0x13ee   :  { %1799 = vrot.lane.b32.xlu0 %v1796_v15, %s3432_s25  ;;  %1797 = vrot.lane.b32.xlu1 %v1796_v15, %s3431_s24 }
0x13f2   :  { %1801 = vrot.lane.b32.xlu1 %v1796_v15, %s3430_s5 }
0x1460   :  { %v1800_v17 = vpop.permute.xlu0 %1799  ;;  %v1798_v19 = vpop.permute.xlu1 %1797 }
0x1461   :  { %v1804_v21 = vmul.f32 %v1800_v17, %v1796_v15  ;;  %v1803_v24 = vmul.f32 %v1798_v19, %v1696_v6  ;;  %v2037_v15 = vld [vmem:[%s4470_s9 + $0x40] sm:$0xff]  ;;  %v2036_v19 = vld [vmem:[%s4470_s9 + $0x38] sm:$0xff] }
0x1463   :  { %v4367_v26 = vadd.f32 %v1804_v21, %v1803_v24  ;;  %v2035_v21 = vld [vmem:[%s4470_s9 + $0x30] sm:$0xff]  ;;  %v2033_v24 = vld [vmem:[%s4470_s9 + $0x20] sm:$0xff] }
0x1464   :  { %v1802_v30 = vpop.permute.xlu1 %1801 }
0x1465   :  { %3344 = vtanh.f32 %v4367_v26 }
0x1472   :  { %v3345_v28 = vpop.eup %3344 }
0x1473   :  { %v1807_v32 = vmul.f32 %v3345_v28, %v1802_v30  ;;  %v2031_v28 = vld [vmem:[%s4470_s9 + $0x10] sm:$0xff]  ;;  %v2030_v30 = vld [vmem:[%s4470_s9 + $0x8] sm:$0xff] }
0x1475   :  { %1808 = vst [vmem:[#allocation3 + $0xa] sm:$0x3] %v1807_v32  ;;  %3173 = vmatmul.mubr.f32.vlgmr.msra.gmra.mxu0 %v1807_v32  ;;  %v2029_v32 = vld [vmem:[%s4470_s9] sm:$0xff] }
0x1476   :  { %3242 = vmatprep.mubr.f32.mxu0 %v2027_v34  ;;  %3211 = vmatpush3.msra.mxu0 %v2044_v1 }
0x1477   :  { %3212 = vmatprep.subr.mxu0 %v2043_v2 }
0x1478   :  { %3213 = vmatpush3.msra.mxu0 %v2043_v2 }
0x1479   :  { %3214 = vmatprep.subr.mxu0 %v2042_v18 }
0x147a   :  { %3215 = vmatpush3.msra.mxu0 %v2042_v18 }
0x147b   :  { %3216 = vmatprep.subr.mxu0 %v2041_v20 }
0x147c   :  { %3217 = vmatpush3.msra.mxu0 %v2041_v20 }
0x147d   :  { %3218 = vmatprep.subr.mxu0 %v2040_v4 }
0x147e   :  { %3219 = vmatpush3.msra.mxu0 %v2040_v4 }
0x147f   :  { %3220 = vmatprep.subr.mxu0 %v2039_v5 }
0x1480   :  { %3221 = vmatpush3.msra.mxu0 %v2039_v5 }
0x1481   :  { %3222 = vmatprep.subr.mxu0 %v2038_v11 }
0x1482   :  { %3223 = vmatpush3.msra.mxu0 %v2038_v11 }
0x1483   :  { %3224 = vmatprep.subr.mxu0 %v2037_v15 }
0x1484   :  { %3225 = vmatpush3.msra.mxu0 %v2037_v15 }
0x1485   :  { %3226 = vmatprep.subr.mxu0 %v2036_v19 }
0x1486   :  { %3227 = vmatpush3.msra.mxu0 %v2036_v19 }
0x1487   :  { %3228 = vmatprep.subr.mxu0 %v2035_v21 }
0x1488   :  { %3229 = vmatpush3.msra.mxu0 %v2035_v21 }
0x1489   :  { %3230 = vmatprep.subr.mxu0 %v2034_v52 }
0x148a   :  { %3231 = vmatpush3.msra.mxu0 %v2034_v52 }
0x148b   :  { %3232 = vmatprep.subr.mxu0 %v2033_v24 }
0x148c   :  { %3233 = vmatpush3.msra.mxu0 %v2033_v24 }
0x1535   :  { %v1892_v35 = vpop.f32.mrf.mxu0 }
0x1536   :  { %v1896_v36 = vadd.f32 %v1892_v35, %v1809_v33 }
0x1537   :  { %v3174_v37 = vpop.f32.mrf.mxu0 }
0x1538   :  { %v2246_v39 = vmul.f32 -1.442695, %v1896_v36  ;;  %v2120_v37 = vld [vmem:[%s4471_s10] sm:$0xff] }
0x153a   :  { %3346 = vpow2.f32 %v2246_v39 }
0x1547   :  { %v3347_v40 = vpop.eup %3346 }
0x1548   :  { %v1900_v42 = vadd.f32 1.0, %v3347_v40  ;;  %v2121_v40 = vld [vmem:[%s4472_s11] sm:$0xff] }
0x154a   :  { %3348 = vrcp.f32 %v1900_v42 }
0x1557   :  { %v3349_v48 = vpop.eup %3348 }
0x1558   :  { %v1903_v53 = vmul.f32 2.0, %v3349_v48 }
0x155a   :  { %v2247_v57 = vadd.f32 -1.0, %v1903_v53 }
0x155c   :  { %v1905_v61 = vsel %vm3749_vm3, %v2247_v57, %v3349_v48 }
0x155d   :  { %1908 = vrot.lane.b32.xlu1 %v1905_v61, %s3432_s25  ;;  %1906 = vrot.lane.b32.xlu0 %v1905_v61, %s3431_s24 }
0x1561   :  { %1910 = vrot.lane.b32.xlu0 %v1905_v61, %s3430_s5 }
0x15cf   :  { %v1909_v49 = vpop.permute.xlu1 %1908  ;;  %v1907_v51 = vpop.permute.xlu0 %1906 }
0x15d0   :  { %v1913_v54 = vmul.f32 %v1909_v49, %v1905_v61  ;;  %v1912_v56 = vmul.f32 %v1907_v51, %v4367_v26  ;;  %v2032_v26 = vld [vmem:[%s4470_s9 + $0x18] sm:$0xff] }
0x15d1   :  { %3234 = vmatprep.subr.mxu0 %v2032_v26 }
0x15d2   :  { %v4392_v58 = vadd.f32 %v1913_v54, %v1912_v56  ;;  %3235 = vmatpush3.msra.mxu0 %v2032_v26 }
0x15d3   :  { %v1911_v62 = vpop.permute.xlu0 %1910  ;;  %3236 = vmatprep.subr.mxu0 %v2031_v28 }
0x15d4   :  { %3350 = vtanh.f32 %v4392_v58  ;;  %3237 = vmatpush3.msra.mxu0 %v2031_v28 }
0x15d5   :  { %3238 = vmatprep.subr.mxu0 %v2030_v30 }
0x15d6   :  { %3239 = vmatpush3.msra.mxu0 %v2030_v30 }
0x15d7   :  { %3240 = vmatprep.subr.mxu0 %v2029_v32 }
0x15d8   :  { %3241 = vmatpush3.msra.mxu0 %v2029_v32 }
0x15e1   :  { %v3351_v60 = vpop.eup %3350 }
0x15e2   :  { %v1916_v63 = vmul.f32 %v3351_v60, %v1911_v62 }
0x15e4   :  { %1917 = vst [vmem:[#allocation3 + $0xc] sm:$0x3] %v1916_v63  ;;  %3208 = vmatmul.mubr.f32.vlgmr.msra.gmra.mxu1 %v1916_v63 }
0x15e5   :  { %3249 = vmatprep.mubr.msk.f32.mxu1 %vm3429_vm0, %v3428_v0 }
0x16a4   :  { %v2001_v6 = vpop.f32.mrf.mxu1 }
0x16a5   :  { %v2005_v8 = vadd.f32 %v2001_v6, %v1918_v3 }
0x16a6   :  { %v3209_v10 = vpop.f32.mrf.mxu1 }
0x16a7   :  { %v2248_v12 = vmul.f32 -1.442695, %v2005_v8 }
0x16a9   :  { %3352 = vpow2.f32 %v2248_v12 }
0x16b6   :  { %v3353_v14 = vpop.eup %3352 }
0x16b7   :  { %v2009_v16 = vadd.f32 1.0, %v3353_v14 }
0x16b9   :  { %3354 = vrcp.f32 %v2009_v16 }
0x16c6   :  { %v3355_v7 = vpop.eup %3354 }
0x16c7   :  { %v2012_v9 = vmul.f32 2.0, %v3355_v7 }
0x16c9   :  { %v2249_v13 = vadd.f32 -1.0, %v2012_v9 }
0x16cb   :  { %v2014_v17 = vsel %vm3749_vm3, %v2249_v13, %v3355_v7 }
0x16cc   :  { %2017 = vrot.lane.b32.xlu0 %v2014_v17, %s3432_s25  ;;  %2015 = vrot.lane.b32.xlu1 %v2014_v17, %s3431_s24 }
0x16d0   :  { %2019 = vrot.lane.b32.xlu1 %v2014_v17, %s3430_s5 }
0x173e   :  { %v2018_v34 = vpop.permute.xlu0 %2017  ;;  %v2016_v22 = vpop.permute.xlu1 %2015 }
0x173f   :  { %v2022_v23 = vmul.f32 %v2018_v34, %v2014_v17  ;;  %v2021_v25 = vmul.f32 %v2016_v22, %v4392_v58 }
0x1741   :  { %v2023_v27 = vadd.f32 %v2022_v23, %v2021_v25 }
0x1742   :  { %v2020_v31 = vpop.permute.xlu1 %2019 }
0x1743   :  { %3356 = vtanh.f32 %v2023_v27 }
0x1750   :  { %v3357_v29 = vpop.eup %3356 }
0x1751   :  { %v2025_v33 = vmul.f32 %v3357_v29, %v2020_v31 }
0x1753   :  { %2026 = vst [vmem:[#allocation3 + $0xe] sm:$0x3] %v2025_v33 }
0x175a   :  { %v2028_v35 = vld [vmem:[#allocation3 + $0x8] sm:$0xff] }
0x175b   :  { %3243 = vmatmul.mubr.f32.vlgmr.msra.gmra.mxu0 %v2028_v35 }
0x181b   :  { %v3244_v36 = vpop.f32.mrf.mxu0 }
0x181c   :  { %3246 = vmatpush3.msra.mxu1 %v3244_v36 }
0x181d   :  { %v2111_v39 = vpop.f32.mrf.mxu0  ;;  %3247 = vmatprep.subr.mxu1 %v3428_v0 }
0x181e   :  { %3248 = vmatpush3.msra.mxu1 %v2111_v39 }
0x181f   :  { %3250 = vmatmul.mubr.msk.f32.vlgmr.msra.gmra.mxu1 %vm2122_vm4, %v2120_v37 }
0x18df   :  { %v2192_v42 = vpop.f32.mrf.mxu1 }
0x18e0   :  { %v2193_v43 = vadd.f32 %v2192_v42, %v2121_v40 }
0x18e1   :  { %v3251_v45 = vpop.f32.mrf.mxu1 }
0x18e2   :  { %2197 = vst.msk [vmem:[#allocation9] sm:$0xff] %vm2196_vm5, %v2193_v43 }
0x18e3   :  { %3409 = shalt.err (!%p3406_p0)
}
0x18e4   :  { %2207 = dma.vmem_to_hbm [thread:$0]  %s2205_s4, 128, %s4473_s12, [#allocation6]  }
0x18e5   :  { %3422 = dma.done.wait [#allocation6], 128  }
0x18e6   :  { %3423 = vsyncadd [#allocation6], 4294967168 }
0x18e7   :  { %2211 = vsyncpa [#allocation5], 1 }
0x18e8   :  { %2212 = vsyncpa [#allocation8], 1 }
0x18e9   :  { %2213 = vsyncpa [#allocation6], 1 }

</bundles_post_ra>
